<compile_context>
chip_gen: v7x
topology: tpu7x:2x2x1
jax: 0.10.0
libtpu: 0.0.40
codegen_flags: <defaults>
</compile_context>

<pallas_src>
import functools
import math

import jax
import jax.numpy as jnp
from jax.experimental import pallas as pl
from jax.experimental.pallas import tpu as pltpu


# ----------------------------------------------------------------------------
# helpers
# ----------------------------------------------------------------------------
def _layer_norm(x, gamma, beta, eps=1e-5):
    mu = jnp.mean(x, axis=-1, keepdims=True)
    var = jnp.mean((x - mu) ** 2, axis=-1, keepdims=True)
    return (x - mu) * jax.lax.rsqrt(var + eps) * gamma + beta


def _round_up(x, m):
    return ((x + m - 1) // m) * m


def _pick_block_b(B, S, target_rows=512):
    """Largest divisor of B such that block_b * S <= target_rows (>=1)."""
    best = 1
    for tb in range(1, B + 1):
        if B % tb == 0 and tb * S <= target_rows:
            best = tb
    return best


def _vmem_limit(per_block_bytes):
    est = 2 * per_block_bytes                 # double-buffered pipeline copies
    est = 2 * est + (4 << 20)                 # headroom for in-kernel intermediates
    return int(min(max(est, 32 << 20), 64 << 20))   # v7x-safe (<= 64 MiB physical)


# ----------------------------------------------------------------------------
# Fused encoder stack kernel.
# grid = (B // block_b, num_layers); batch axis "parallel", layer axis "arbitrary".
# Activations stay resident in VMEM scratch across the layer axis.
# ----------------------------------------------------------------------------
def _encoder_kernel(num_heads,
                    x_ref,                          # (TB, S, H)  bf16 (layer-0 input)
                    vl_ref,                         # (TB, 1, 1)  int32 valid lens
                    wqkv_ref, bqkv_ref,             # (1, H, 3H) bf16, (1, 1, 3H) f32
                    wo_ref, bo_ref,                 # (1, H, H)  bf16, (1, 1, H)  f32
                    g1_ref, be1_ref,                # (1, 1, H)  f32
                    w1_ref, b1_ref,                 # (1, H, F)  bf16, (1, 1, F)  f32
                    w2_ref, b2_ref,                 # (1, F, H)  bf16, (1, 1, H)  f32
                    g2_ref, be2_ref,                # (1, 1, H)  f32
                    out_ref,                        # (TB, S, H) bf16
                    x_sc):                          # VMEM (TB*S, H) f32 scratch
    layer = pl.program_id(1)
    TB, S, H = x_ref.shape
    nh = num_heads
    dh = H // nh
    M = TB * S
    G = TB * nh

    # Load activations into VMEM scratch once; they stay resident across layers.
    @pl.when(layer == 0)
    def _():
        x_sc[...] = x_ref[...].astype(jnp.float32).reshape(M, H)

    x = x_sc[...]                                               # (M, H) f32

    # Fused QKV projection (1/sqrt(dh) already folded into q-columns of wqkv).
    qkv = jnp.dot(x.astype(jnp.bfloat16), wqkv_ref[0],
                  preferred_element_type=jnp.float32) + bqkv_ref[0]    # (M, 3H)
    qkv = qkv.astype(jnp.bfloat16)

    def split_heads(z):                                         # (M, H) -> (G, S, dh)
        z4 = z.reshape(TB, S, nh, dh)
        return pltpu.einshape("bshd->bhsd", z4).reshape(G, S, dh)

    qh = split_heads(qkv[:, :H])
    kh = split_heads(qkv[:, H:2 * H])
    vh = split_heads(qkv[:, 2 * H:])

    # Head-batched attention (f32 accumulation on the MXU).
    scores = jnp.einsum('bqd,bkd->bqk', qh, kh,
                        preferred_element_type=jnp.float32)     # (G, S, S)
    col = jax.lax.broadcasted_iota(jnp.int32, (1, 1, 1, S), 3)
    vl = vl_ref[...].reshape(TB, 1, 1, 1)
    mask = col < vl                                             # (TB, 1, 1, S)
    scores = jnp.where(mask, scores.reshape(TB, nh, S, S), -1e6)
    p = jax.nn.softmax(scores, axis=-1)                         # f32 softmax
    ctx = jnp.einsum('bqk,bkd->bqd',
                     p.reshape(G, S, S).astype(jnp.bfloat16), vh,
                     preferred_element_type=jnp.float32)        # (G, S, dh)
    attn = pltpu.einshape("bhsd->bshd",
                          ctx.reshape(TB, nh, S, dh)).reshape(M, H)

    o = jnp.dot(attn.astype(jnp.bfloat16), wo_ref[0],
                preferred_element_type=jnp.float32) + bo_ref[0]
    y = _layer_norm(x + o, g1_ref[0], be1_ref[0])               # AddNorm 1

    f = jnp.maximum(
        jnp.dot(y.astype(jnp.bfloat16), w1_ref[0],
                preferred_element_type=jnp.float32) + b1_ref[0], 0.0)
    f = jnp.dot(f.astype(jnp.bfloat16), w2_ref[0],
                preferred_element_type=jnp.float32) + b2_ref[0]
    z = _layer_norm(y + f, g2_ref[0], be2_ref[0])               # AddNorm 2

    x_sc[...] = z                                               # carry to next layer

    @pl.when(layer == pl.num_programs(1) - 1)
    def _():
        out_ref[...] = z.reshape(TB, S, H).astype(out_ref.dtype)


def encoder_forward(x, valid_lens, p, num_heads, block_b=None):
    B, S, H = x.shape
    L = p['wqkv'].shape[0]
    if block_b is None:
        block_b = _pick_block_b(B, S)
    assert B % block_b == 0

    vl = valid_lens.astype(jnp.int32).reshape(B, 1, 1)

    weights = [p['wqkv'], p['bqkv'], p['wo'], p['bo'],
               p['g1'], p['be1'], p['w1'], p['b1'],
               p['w2'], p['b2'], p['g2'], p['be2']]

    def w_spec(a):
        blk = (1,) + tuple(a.shape[1:])
        return pl.BlockSpec(blk, lambda b, l: (l, 0, 0))

    in_specs = ([pl.BlockSpec((block_b, S, H), lambda b, l: (b, 0, 0)),
                 pl.BlockSpec((block_b, 1, 1), lambda b, l: (b, 0, 0))]
                + [w_spec(w) for w in weights])

    per_block_bytes = (
        2 * block_b * S * H * x.dtype.itemsize                     # x block + out block
        + block_b * 4                                              # valid_lens
        + sum(int(w.size // L) * w.dtype.itemsize for w in weights)  # one layer's weights
        + block_b * S * H * 4)                                     # f32 scratch

    kernel = functools.partial(_encoder_kernel, num_heads)
    return pl.pallas_call(
        kernel,
        out_shape=jax.ShapeDtypeStruct((B, S, H), jnp.bfloat16),
        grid=(B // block_b, L),
        in_specs=in_specs,
        out_specs=pl.BlockSpec((block_b, S, H), lambda b, l: (b, 0, 0)),
        scratch_shapes=[pltpu.VMEM((block_b * S, H), jnp.float32)],
        compiler_params=pltpu.CompilerParams(
            dimension_semantics=("parallel", "arbitrary"),
            vmem_limit_bytes=_vmem_limit(per_block_bytes)),
    )(x, vl, *weights)


# ----------------------------------------------------------------------------
# MaskLM head: (1) Linear -> ReLU -> LayerNorm once, (2) vocab projection tiled
# over a 128-padded vocab axis with "parallel" semantics (megacore-safe).
# ----------------------------------------------------------------------------
def _mlm_hidden_kernel(x_ref, w1_ref, b1_ref, g_ref, be_ref, h_ref):
    h = jnp.dot(x_ref[...].astype(jnp.bfloat16), w1_ref[...],
                preferred_element_type=jnp.float32) + b1_ref[...]
    h = jnp.maximum(h, 0.0)
    h_ref[...] = _layer_norm(h, g_ref[...], be_ref[...]).astype(h_ref.dtype)


def _mlm_proj_kernel(h_ref, w2_ref, b2_ref, o_ref):
    o_ref[...] = jnp.dot(h_ref[...], w2_ref[...],
                         preferred_element_type=jnp.float32) + b2_ref[...]


def mlm_head(masked_x, p, tile_v=None):
    N, Hin = masked_x.shape
    Hh = p['w1'].shape[1]
    V = p['w2'].shape[1]

    # Stage 1: shared transform, single small call, bf16 output reused by all tiles.
    vmem = pl.BlockSpec(memory_space=pltpu.MemorySpace.VMEM)
    h = pl.pallas_call(
        _mlm_hidden_kernel,
        out_shape=jax.ShapeDtypeStruct((N, Hh), jnp.bfloat16),
        in_specs=[vmem] * 5,
        out_specs=vmem,
    )(masked_x, p['w1'], p['b1'], p['g'], p['be'])

    # Stage 2: vocab projection streamed over 128-aligned vocab tiles.
    if tile_v is None:
        tile_v = min(2048, _round_up(V, 128))
    V_pad = _round_up(V, tile_v)
    w2, b2 = p['w2'], p['b2']
    if V_pad != V:
        w2 = jnp.pad(w2, ((0, 0), (0, V_pad - V)))
        b2 = jnp.pad(b2, ((0, 0), (0, V_pad - V)))

    per_block_bytes = (N * Hh * 2 + Hh * tile_v * 2 + tile_v * 4 + N * tile_v * 4)
    logits = pl.pallas_call(
        _mlm_proj_kernel,
        out_shape=jax.ShapeDtypeStruct((N, V_pad), jnp.float32),
        grid=(V_pad // tile_v,),
        in_specs=[pl.BlockSpec((N, Hh), lambda j: (0, 0)),
                  pl.BlockSpec((Hh, tile_v), lambda j: (0, j)),
                  pl.BlockSpec((1, tile_v), lambda j: (0, j))],
        out_specs=pl.BlockSpec((N, tile_v), lambda j: (0, j)),
        compiler_params=pltpu.CompilerParams(
            dimension_semantics=("parallel",),
            vmem_limit_bytes=_vmem_limit(per_block_bytes)),
    )(h, w2, b2)
    return logits[:, :V]


# ----------------------------------------------------------------------------
# hidden (Linear + Tanh on CLS token) fused with NSP Linear; NSP weights are
# pre-padded to a 128-lane slab, logits sliced to (B, 2) in the wrapper.
# ----------------------------------------------------------------------------
def _nsp_kernel(x_ref, wh_ref, bh_ref, wn_ref, bn_ref, o_ref):
    h = jnp.tanh(jnp.dot(x_ref[...].astype(jnp.bfloat16), wh_ref[...],
                         preferred_element_type=jnp.float32) + bh_ref[...])
    o_ref[...] = jnp.dot(h.astype(jnp.bfloat16), wn_ref[...],
                         preferred_element_type=jnp.float32) + bn_ref[...]


def nsp_head(cls_x, hidden_p, nsp_p):
    B, H = cls_x.shape
    args = (cls_x, hidden_p['w'], hidden_p['b'], nsp_p['w'], nsp_p['b'])
    vmem = pl.BlockSpec(memory_space=pltpu.MemorySpace.VMEM)
    padded = pl.pallas_call(
        _nsp_kernel,
        out_shape=jax.ShapeDtypeStruct((B, nsp_p['w'].shape[1]), jnp.float32),
        in_specs=[vmem] * len(args),
        out_specs=vmem,
    )(*args)
    return padded[:, :nsp_p['n_out']]


# ----------------------------------------------------------------------------
# Parameter init (deterministic, synthetic, kernel-ready layout):
# matmul weights bf16, QKV fused with the 1/sqrt(dh) scale folded in, per-layer
# weights stacked along a leading L axis for the fused encoder grid.
# ----------------------------------------------------------------------------
def init_bert_params(key, cfg):
    V, H = cfg['vocab_size'], cfg['num_hiddens']
    F, L, max_len = cfg['ffn_num_hiddens'], cfg['num_layers'], cfg['max_len']
    nh = cfg['num_heads']
    scale = 1.0 / math.sqrt(H // nh)
    keys = iter(jax.random.split(key, 16 + 8 * L))

    def nrm(shape):
        return jax.random.normal(next(keys), shape, jnp.float32) * 0.02

    params = {
        'token_emb': nrm((V, H)),
        'seg_emb': nrm((2, H)),
        'pos_emb': nrm((1, max_len, H)),
    }

    stacks = {k: [] for k in ('wqkv', 'bqkv', 'wo', 'bo', 'g1', 'be1',
                              'w1', 'b1', 'w2', 'b2', 'g2', 'be2')}
    for _ in range(L):
        wq, wk, wv = nrm((H, H)), nrm((H, H)), nrm((H, H))
        stacks['wqkv'].append(
            jnp.concatenate([wq * scale, wk, wv], axis=1).astype(jnp.bfloat16))
        stacks['bqkv'].append(jnp.zeros((1, 3 * H), jnp.float32))
        stacks['wo'].append(nrm((H, H)).astype(jnp.bfloat16))
        stacks['bo'].append(jnp.zeros((1, H), jnp.float32))
        stacks['g1'].append(jnp.ones((1, H), jnp.float32))
        stacks['be1'].append(jnp.zeros((1, H), jnp.float32))
        stacks['w1'].append(nrm((H, F)).astype(jnp.bfloat16))
        stacks['b1'].append(jnp.zeros((1, F), jnp.float32))
        stacks['w2'].append(nrm((F, H)).astype(jnp.bfloat16))
        stacks['b2'].append(jnp.zeros((1, H), jnp.float32))
        stacks['g2'].append(jnp.ones((1, H), jnp.float32))
        stacks['be2'].append(jnp.zeros((1, H), jnp.float32))
    params['enc'] = {k: jnp.stack(v) for k, v in stacks.items()}

    params['hidden'] = {'w': nrm((H, H)).astype(jnp.bfloat16),
                        'b': jnp.zeros((1, H), jnp.float32)}
    params['mlm'] = {
        'w1': nrm((H, H)).astype(jnp.bfloat16), 'b1': jnp.zeros((1, H), jnp.float32),
        'g': jnp.ones((1, H), jnp.float32), 'be': jnp.zeros((1, H), jnp.float32),
        'w2': nrm((H, V)).astype(jnp.bfloat16), 'b2': jnp.zeros((1, V), jnp.float32),
    }
    NSP_PAD = 128   # lane-dense output slab; sliced to 2 classes in the wrapper
    wn = nrm((H, 2))
    params['nsp'] = {'w': jnp.pad(wn, ((0, 0), (0, NSP_PAD - 2))).astype(jnp.bfloat16),
                     'b': jnp.zeros((1, NSP_PAD), jnp.float32),
                     'n_out': 2}
    return params


def bert_forward(params, tokens, segments, valid_lens, pred_positions, cfg):
    B, S = tokens.shape
    # embeddings / masked-position gathers (data-dependent) are glue in plain JAX
    X = params['token_emb'][tokens] + params['seg_emb'][segments]
    X = X + params['pos_emb'][:, :S, :]
    X = X.astype(jnp.bfloat16)                     # bf16 activation handoff

    encoded_X = encoder_forward(X, valid_lens, params['enc'], cfg['num_heads'])

    if pred_positions is not None:
        P = pred_positions.shape[1]
        batch_idx = jnp.repeat(jnp.arange(B), P)
        masked_X = encoded_X[batch_idx, pred_positions.reshape(-1)]   # (B*P, H)
        mlm_Y_hat = mlm_head(masked_X, params['mlm']).reshape(B, P, -1)
    else:
        mlm_Y_hat = None

    nsp_Y_hat = nsp_head(encoded_X[:, 0, :], params['hidden'], params['nsp'])
    return encoded_X, mlm_Y_hat, nsp_Y_hat


if __name__ == "__main__":
    cfg = dict(vocab_size=128, num_hiddens=128, ffn_num_hiddens=256,
               num_heads=2, num_layers=2, max_len=64)

    key = jax.random.PRNGKey(0)
    pkey, tkey = jax.random.split(key, 2)
    params = init_bert_params(pkey, cfg)

    B, S, P = 2, 8, 3
    tokens = jax.random.randint(tkey, (B, S), 0, cfg['vocab_size'], dtype=jnp.int32)
    segments = jnp.concatenate(
        [jnp.zeros((B, S // 2), jnp.int32), jnp.ones((B, S // 2), jnp.int32)], axis=1)
    valid_lens = jnp.array([S, 5], dtype=jnp.int32)
    pred_positions = jnp.array([[1, 3, 5], [2, 4, 6]], dtype=jnp.int32)

    encoded_X, mlm_Y_hat, nsp_Y_hat = bert_forward(
        params, tokens, segments, valid_lens, pred_positions, cfg)
    jax.block_until_ready((encoded_X, mlm_Y_hat, nsp_Y_hat))

    assert encoded_X.shape == (B, S, cfg['num_hiddens'])
    assert mlm_Y_hat.shape == (B, P, cfg['vocab_size'])
    assert nsp_Y_hat.shape == (B, 2)
    print("KERNEL_OK")
</pallas_src>

<mosaic_0001>
module attributes {stable_mosaic.version = 11 : i64} {
  func.func @_encoder_kernel(%arg0: i32, %arg1: i32, %arg2: memref<2x8x128xbf16, #tpu.memory_space<vmem>>, %arg3: memref<2x1x1xi32, #tpu.memory_space<vmem>>, %arg4: memref<1x128x384xbf16, #tpu.memory_space<vmem>>, %arg5: memref<1x1x384xf32, #tpu.memory_space<vmem>>, %arg6: memref<1x128x128xbf16, #tpu.memory_space<vmem>>, %arg7: memref<1x1x128xf32, #tpu.memory_space<vmem>>, %arg8: memref<1x1x128xf32, #tpu.memory_space<vmem>>, %arg9: memref<1x1x128xf32, #tpu.memory_space<vmem>>, %arg10: memref<1x128x256xbf16, #tpu.memory_space<vmem>>, %arg11: memref<1x1x256xf32, #tpu.memory_space<vmem>>, %arg12: memref<1x256x128xbf16, #tpu.memory_space<vmem>>, %arg13: memref<1x1x128xf32, #tpu.memory_space<vmem>>, %arg14: memref<1x1x128xf32, #tpu.memory_space<vmem>>, %arg15: memref<1x1x128xf32, #tpu.memory_space<vmem>>, %arg16: memref<2x8x128xbf16, #tpu.memory_space<vmem>>, %arg17: memref<16x128xf32, #tpu.memory_space<vmem>>) attributes {dimension_semantics = [#tpu.dimension_semantics<parallel>, #tpu.dimension_semantics<arbitrary>], iteration_bounds = array<i64: 1, 2>, scalar_prefetch = 0 : i64, scratch_operands = 1 : i64, tpu.core_type = #tpu.core_type<tc>, window_params = [{transform_indices = @transform_0, window_bounds = array<i64: 2, 8, 128>}, {transform_indices = @transform_1, window_bounds = array<i64: 2, 1, 1>}, {transform_indices = @transform_2, window_bounds = array<i64: 1, 128, 384>}, {transform_indices = @transform_3, window_bounds = array<i64: 1, 1, 384>}, {transform_indices = @transform_4, window_bounds = array<i64: 1, 128, 128>}, {transform_indices = @transform_5, window_bounds = array<i64: 1, 1, 128>}, {transform_indices = @transform_6, window_bounds = array<i64: 1, 1, 128>}, {transform_indices = @transform_7, window_bounds = array<i64: 1, 1, 128>}, {transform_indices = @transform_8, window_bounds = array<i64: 1, 128, 256>}, {transform_indices = @transform_9, window_bounds = array<i64: 1, 1, 256>}, {transform_indices = @transform_10, window_bounds = array<i64: 1, 256, 128>}, {transform_indices = @transform_11, window_bounds = array<i64: 1, 1, 128>}, {transform_indices = @transform_12, window_bounds = array<i64: 1, 1, 128>}, {transform_indices = @transform_13, window_bounds = array<i64: 1, 1, 128>}, {transform_indices = @transform_14, window_bounds = array<i64: 2, 8, 128>}]} {
    %c0_i32 = arith.constant 0 : i32
    %0 = arith.cmpi eq, %arg1, %c0_i32 : i32
    %1 = arith.extui %0 : i1 to i32
    %c0_i32_0 = arith.constant 0 : i32
    %2 = arith.cmpi ne, %1, %c0_i32_0 : i32
    scf.if %2 {
      %c0_64 = arith.constant 0 : index
      %c0_65 = arith.constant 0 : index
      %c0_66 = arith.constant 0 : index
      %138 = vector.load %arg2[%c0_64, %c0_65, %c0_66] : memref<2x8x128xbf16, #tpu.memory_space<vmem>>, vector<2x8x128xbf16>
      %139 = arith.extf %138 : vector<2x8x128xbf16> to vector<2x8x128xf32>
      %140 = vector.shape_cast %139 : vector<2x8x128xf32> to vector<16x128xf32>
      %c0_67 = arith.constant 0 : index
      %c0_68 = arith.constant 0 : index
      %141 = vector.load %arg17[%c0_67, %c0_68] : memref<16x128xf32, #tpu.memory_space<vmem>>, vector<16x128xf32>
      tpu.vector_store %arg17[%c0_67, %c0_68], %140 {strides = array<i32>} : memref<16x128xf32, #tpu.memory_space<vmem>>, vector<16x128xf32>,
    } else {
    }
    %c0 = arith.constant 0 : index
    %c0_1 = arith.constant 0 : index
    %3 = vector.load %arg17[%c0, %c0_1] : memref<16x128xf32, #tpu.memory_space<vmem>>, vector<16x128xf32>
    %4 = arith.truncf %3 : vector<16x128xf32> to vector<16x128xbf16>
    %c0_2 = arith.constant 0 : index
    %c0_3 = arith.constant 0 : index
    %c0_4 = arith.constant 0 : index
    %5 = vector.load %arg4[%c0_2, %c0_3, %c0_4] : memref<1x128x384xbf16, #tpu.memory_space<vmem>>, vector<1x128x384xbf16>
    %6 = vector.shape_cast %5 : vector<1x128x384xbf16> to vector<128x384xbf16>
    %cst = arith.constant dense<0.000000e+00> : vector<16x384xf32>
    %7 = tpu.matmul %4, %6, %cst {dimension_numbers = #tpu.dot_dimension_numbers<[1], [0], [0], [1], [0, 0, 1, 1], [], []>} : vector<16x128xbf16>, vector<128x384xbf16>, vector<16x384xf32> -> vector<16x384xf32>
    %c0_5 = arith.constant 0 : index
    %c0_6 = arith.constant 0 : index
    %c0_7 = arith.constant 0 : index
    %8 = vector.load %arg5[%c0_5, %c0_6, %c0_7] : memref<1x1x384xf32, #tpu.memory_space<vmem>>, vector<1x1x384xf32>
    %9 = vector.shape_cast %8 : vector<1x1x384xf32> to vector<1x384xf32>
    %10 = vector.broadcast %9 : vector<1x384xf32> to vector<16x384xf32>
    %11 = arith.addf %7, %10 : vector<16x384xf32>
    %12 = arith.truncf %11 : vector<16x384xf32> to vector<16x384xbf16>
    %13 = vector.extract_strided_slice %12 {offsets = [0, 0], sizes = [16, 128], strides = [1, 1]} : vector<16x384xbf16> to vector<16x128xbf16>
    %14 = vector.shape_cast %13 : vector<16x128xbf16> to vector<2x8x2x64xbf16>
    %15 = tpu.transpose %14, [0, 2, 1, 3] : vector<2x8x2x64xbf16> -> vector<2x2x8x64xbf16>
    %16 = vector.shape_cast %15 : vector<2x2x8x64xbf16> to vector<4x8x64xbf16>
    %17 = vector.extract_strided_slice %12 {offsets = [0, 128], sizes = [16, 128], strides = [1, 1]} : vector<16x384xbf16> to vector<16x128xbf16>
    %18 = vector.shape_cast %17 : vector<16x128xbf16> to vector<2x8x2x64xbf16>
    %19 = tpu.transpose %18, [0, 2, 1, 3] : vector<2x8x2x64xbf16> -> vector<2x2x8x64xbf16>
    %20 = vector.shape_cast %19 : vector<2x2x8x64xbf16> to vector<4x8x64xbf16>
    %21 = vector.extract_strided_slice %12 {offsets = [0, 256], sizes = [16, 128], strides = [1, 1]} : vector<16x384xbf16> to vector<16x128xbf16>
    %22 = vector.shape_cast %21 : vector<16x128xbf16> to vector<2x8x2x64xbf16>
    %23 = tpu.transpose %22, [0, 2, 1, 3] : vector<2x8x2x64xbf16> -> vector<2x2x8x64xbf16>
    %24 = vector.shape_cast %23 : vector<2x2x8x64xbf16> to vector<4x8x64xbf16>
    "tpu.trace_start"() <{level = 10 : i32, message = "bqd,bkd->bqk"}> : () -> ()
    %cst_8 = arith.constant dense<0.000000e+00> : vector<4x8x8xf32>
    %25 = tpu.matmul %16, %20, %cst_8 {dimension_numbers = #tpu.dot_dimension_numbers<[2], [2], [1], [1], [0, 0, 0, 1, 1, 1], [0], [0]>} : vector<4x8x64xbf16>, vector<4x8x64xbf16>, vector<4x8x8xf32> -> vector<4x8x8xf32>
    "tpu.trace_stop"() : () -> ()
    %26 = tpu.iota {dimensions = array<i32: 3>} : vector<1x1x1x8xi32>
    %c0_9 = arith.constant 0 : index
    %c0_10 = arith.constant 0 : index
    %c0_11 = arith.constant 0 : index
    %27 = vector.load %arg3[%c0_9, %c0_10, %c0_11] : memref<2x1x1xi32, #tpu.memory_space<vmem>>, vector<2x1x1xi32>
    %28 = vector.shape_cast %27 : vector<2x1x1xi32> to vector<2x1x1x1xi32>
    %29 = vector.broadcast %26 : vector<1x1x1x8xi32> to vector<2x1x1x8xi32>
    %30 = vector.broadcast %28 : vector<2x1x1x1xi32> to vector<2x1x1x8xi32>
    %31 = arith.cmpi slt, %29, %30 : vector<2x1x1x8xi32>
    %32 = vector.shape_cast %25 : vector<4x8x8xf32> to vector<2x2x8x8xf32>
    %cst_12 = arith.constant -1.000000e+06 : f32
    %33 = vector.shape_cast %31 : vector<2x1x1x8xi1> to vector<2x1x1x8xi1>
    %34 = vector.broadcast %33 : vector<2x1x1x8xi1> to vector<2x2x8x8xi1>
    %35 = vector.broadcast %cst_12 : f32 to vector<2x2x8x8xf32>
    %36 = arith.select %34, %32, %35 : vector<2x2x8x8xi1>, vector<2x2x8x8xf32>
    %cst_13 = arith.constant dense<0xFF800000> : vector<2x2x8xf32>
    %37 = vector.multi_reduction <maximumf>, %36, %cst_13 [3] : vector<2x2x8x8xf32> to vector<2x2x8xf32>
    %cst_14 = arith.constant 0xFF800000 : f32
    %38 = vector.broadcast %cst_14 : f32 to vector<2x2x8xf32>
    %39 = arith.maximumf %38, %37 : vector<2x2x8xf32>
    %40 = vector.shape_cast %39 : vector<2x2x8xf32> to vector<2x2x8x1xf32>
    %41 = vector.broadcast %40 : vector<2x2x8x1xf32> to vector<2x2x8x8xf32>
    %42 = arith.subf %36, %41 : vector<2x2x8x8xf32>
    %43 = math.exp %42 : vector<2x2x8x8xf32>
    %cst_15 = arith.constant dense<0.000000e+00> : vector<2x2x8xf32>
    %44 = vector.multi_reduction <add>, %43, %cst_15 [3] : vector<2x2x8x8xf32> to vector<2x2x8xf32>
    %45 = vector.shape_cast %44 : vector<2x2x8xf32> to vector<2x2x8x1xf32>
    %46 = vector.broadcast %45 : vector<2x2x8x1xf32> to vector<2x2x8x8xf32>
    %47 = arith.divf %43, %46 : vector<2x2x8x8xf32>
    %48 = vector.shape_cast %47 : vector<2x2x8x8xf32> to vector<4x8x8xf32>
    %49 = arith.truncf %48 : vector<4x8x8xf32> to vector<4x8x8xbf16>
    "tpu.trace_start"() <{level = 10 : i32, message = "bqk,bkd->bqd"}> : () -> ()
    %cst_16 = arith.constant dense<0.000000e+00> : vector<4x8x64xf32>
    %50 = tpu.matmul %49, %24, %cst_16 {dimension_numbers = #tpu.dot_dimension_numbers<[2], [1], [1], [2], [0, 0, 0, 1, 1, 2], [0], [0]>} : vector<4x8x8xbf16>, vector<4x8x64xbf16>, vector<4x8x64xf32> -> vector<4x8x64xf32>
    "tpu.trace_stop"() : () -> ()
    %51 = vector.shape_cast %50 : vector<4x8x64xf32> to vector<2x2x8x64xf32>
    %52 = tpu.transpose %51, [0, 2, 1, 3] : vector<2x2x8x64xf32> -> vector<2x8x2x64xf32>
    %53 = vector.shape_cast %52 : vector<2x8x2x64xf32> to vector<16x128xf32>
    %54 = arith.truncf %53 : vector<16x128xf32> to vector<16x128xbf16>
    %c0_17 = arith.constant 0 : index
    %c0_18 = arith.constant 0 : index
    %c0_19 = arith.constant 0 : index
    %55 = vector.load %arg6[%c0_17, %c0_18, %c0_19] : memref<1x128x128xbf16, #tpu.memory_space<vmem>>, vector<1x128x128xbf16>
    %56 = vector.shape_cast %55 : vector<1x128x128xbf16> to vector<128x128xbf16>
    %cst_20 = arith.constant dense<0.000000e+00> : vector<16x128xf32>
    %57 = tpu.matmul %54, %56, %cst_20 {dimension_numbers = #tpu.dot_dimension_numbers<[1], [0], [0], [1], [0, 0, 1, 1], [], []>} : vector<16x128xbf16>, vector<128x128xbf16>, vector<16x128xf32> -> vector<16x128xf32>
    %c0_21 = arith.constant 0 : index
    %c0_22 = arith.constant 0 : index
    %c0_23 = arith.constant 0 : index
    %58 = vector.load %arg7[%c0_21, %c0_22, %c0_23] : memref<1x1x128xf32, #tpu.memory_space<vmem>>, vector<1x1x128xf32>
    %59 = vector.shape_cast %58 : vector<1x1x128xf32> to vector<1x128xf32>
    %60 = vector.broadcast %59 : vector<1x128xf32> to vector<16x128xf32>
    %61 = arith.addf %57, %60 : vector<16x128xf32>
    %62 = arith.addf %3, %61 : vector<16x128xf32>
    %c0_24 = arith.constant 0 : index
    %c0_25 = arith.constant 0 : index
    %c0_26 = arith.constant 0 : index
    %63 = vector.load %arg8[%c0_24, %c0_25, %c0_26] : memref<1x1x128xf32, #tpu.memory_space<vmem>>, vector<1x1x128xf32>
    %64 = vector.shape_cast %63 : vector<1x1x128xf32> to vector<1x128xf32>
    %c0_27 = arith.constant 0 : index
    %c0_28 = arith.constant 0 : index
    %c0_29 = arith.constant 0 : index
    %65 = vector.load %arg9[%c0_27, %c0_28, %c0_29] : memref<1x1x128xf32, #tpu.memory_space<vmem>>, vector<1x1x128xf32>
    %66 = vector.shape_cast %65 : vector<1x1x128xf32> to vector<1x128xf32>
    %cst_30 = arith.constant dense<0.000000e+00> : vector<16xf32>
    %67 = vector.multi_reduction <add>, %62, %cst_30 [1] : vector<16x128xf32> to vector<16xf32>
    %68 = vector.shape_cast %67 : vector<16xf32> to vector<16x1xf32>
    %cst_31 = arith.constant 1.280000e+02 : f32
    %69 = vector.broadcast %cst_31 : f32 to vector<16x1xf32>
    %70 = arith.divf %68, %69 : vector<16x1xf32>
    %71 = vector.broadcast %70 : vector<16x1xf32> to vector<16x128xf32>
    %72 = arith.subf %62, %71 : vector<16x128xf32>
    %73 = arith.mulf %72, %72 : vector<16x128xf32>
    %cst_32 = arith.constant dense<0.000000e+00> : vector<16xf32>
    %74 = vector.multi_reduction <add>, %73, %cst_32 [1] : vector<16x128xf32> to vector<16xf32>
    %75 = vector.shape_cast %74 : vector<16xf32> to vector<16x1xf32>
    %cst_33 = arith.constant 1.280000e+02 : f32
    %76 = vector.broadcast %cst_33 : f32 to vector<16x1xf32>
    %77 = arith.divf %75, %76 : vector<16x1xf32>
    %78 = vector.broadcast %70 : vector<16x1xf32> to vector<16x128xf32>
    %79 = arith.subf %62, %78 : vector<16x128xf32>
    %cst_34 = arith.constant 9.99999974E-6 : f32
    %80 = vector.broadcast %cst_34 : f32 to vector<16x1xf32>
    %81 = arith.addf %77, %80 : vector<16x1xf32>
    %82 = math.rsqrt %81 : vector<16x1xf32>
    %83 = vector.broadcast %82 : vector<16x1xf32> to vector<16x128xf32>
    %84 = arith.mulf %79, %83 : vector<16x128xf32>
    %85 = vector.broadcast %64 : vector<1x128xf32> to vector<16x128xf32>
    %86 = arith.mulf %84, %85 : vector<16x128xf32>
    %87 = vector.broadcast %66 : vector<1x128xf32> to vector<16x128xf32>
    %88 = arith.addf %86, %87 : vector<16x128xf32>
    %89 = arith.truncf %88 : vector<16x128xf32> to vector<16x128xbf16>
    %c0_35 = arith.constant 0 : index
    %c0_36 = arith.constant 0 : index
    %c0_37 = arith.constant 0 : index
    %90 = vector.load %arg10[%c0_35, %c0_36, %c0_37] : memref<1x128x256xbf16, #tpu.memory_space<vmem>>, vector<1x128x256xbf16>
    %91 = vector.shape_cast %90 : vector<1x128x256xbf16> to vector<128x256xbf16>
    %cst_38 = arith.constant dense<0.000000e+00> : vector<16x256xf32>
    %92 = tpu.matmul %89, %91, %cst_38 {dimension_numbers = #tpu.dot_dimension_numbers<[1], [0], [0], [1], [0, 0, 1, 1], [], []>} : vector<16x128xbf16>, vector<128x256xbf16>, vector<16x256xf32> -> vector<16x256xf32>
    %c0_39 = arith.constant 0 : index
    %c0_40 = arith.constant 0 : index
    %c0_41 = arith.constant 0 : index
    %93 = vector.load %arg11[%c0_39, %c0_40, %c0_41] : memref<1x1x256xf32, #tpu.memory_space<vmem>>, vector<1x1x256xf32>
    %94 = vector.shape_cast %93 : vector<1x1x256xf32> to vector<1x256xf32>
    %95 = vector.broadcast %94 : vector<1x256xf32> to vector<16x256xf32>
    %96 = arith.addf %92, %95 : vector<16x256xf32>
    %cst_42 = arith.constant 0.000000e+00 : f32
    %97 = vector.broadcast %cst_42 : f32 to vector<16x256xf32>
    %98 = arith.maximumf %96, %97 : vector<16x256xf32>
    %99 = arith.truncf %98 : vector<16x256xf32> to vector<16x256xbf16>
    %c0_43 = arith.constant 0 : index
    %c0_44 = arith.constant 0 : index
    %c0_45 = arith.constant 0 : index
    %100 = vector.load %arg12[%c0_43, %c0_44, %c0_45] : memref<1x256x128xbf16, #tpu.memory_space<vmem>>, vector<1x256x128xbf16>
    %101 = vector.shape_cast %100 : vector<1x256x128xbf16> to vector<256x128xbf16>
    %cst_46 = arith.constant dense<0.000000e+00> : vector<16x128xf32>
    %102 = tpu.matmul %99, %101, %cst_46 {dimension_numbers = #tpu.dot_dimension_numbers<[1], [0], [0], [1], [0, 0, 1, 1], [], []>} : vector<16x256xbf16>, vector<256x128xbf16>, vector<16x128xf32> -> vector<16x128xf32>
    %c0_47 = arith.constant 0 : index
    %c0_48 = arith.constant 0 : index
    %c0_49 = arith.constant 0 : index
    %103 = vector.load %arg13[%c0_47, %c0_48, %c0_49] : memref<1x1x128xf32, #tpu.memory_space<vmem>>, vector<1x1x128xf32>
    %104 = vector.shape_cast %103 : vector<1x1x128xf32> to vector<1x128xf32>
    %105 = vector.broadcast %104 : vector<1x128xf32> to vector<16x128xf32>
    %106 = arith.addf %102, %105 : vector<16x128xf32>
    %107 = arith.addf %88, %106 : vector<16x128xf32>
    %c0_50 = arith.constant 0 : index
    %c0_51 = arith.constant 0 : index
    %c0_52 = arith.constant 0 : index
    %108 = vector.load %arg14[%c0_50, %c0_51, %c0_52] : memref<1x1x128xf32, #tpu.memory_space<vmem>>, vector<1x1x128xf32>
    %109 = vector.shape_cast %108 : vector<1x1x128xf32> to vector<1x128xf32>
    %c0_53 = arith.constant 0 : index
    %c0_54 = arith.constant 0 : index
    %c0_55 = arith.constant 0 : index
    %110 = vector.load %arg15[%c0_53, %c0_54, %c0_55] : memref<1x1x128xf32, #tpu.memory_space<vmem>>, vector<1x1x128xf32>
    %111 = vector.shape_cast %110 : vector<1x1x128xf32> to vector<1x128xf32>
    %cst_56 = arith.constant dense<0.000000e+00> : vector<16xf32>
    %112 = vector.multi_reduction <add>, %107, %cst_56 [1] : vector<16x128xf32> to vector<16xf32>
    %113 = vector.shape_cast %112 : vector<16xf32> to vector<16x1xf32>
    %cst_57 = arith.constant 1.280000e+02 : f32
    %114 = vector.broadcast %cst_57 : f32 to vector<16x1xf32>
    %115 = arith.divf %113, %114 : vector<16x1xf32>
    %116 = vector.broadcast %115 : vector<16x1xf32> to vector<16x128xf32>
    %117 = arith.subf %107, %116 : vector<16x128xf32>
    %118 = arith.mulf %117, %117 : vector<16x128xf32>
    %cst_58 = arith.constant dense<0.000000e+00> : vector<16xf32>
    %119 = vector.multi_reduction <add>, %118, %cst_58 [1] : vector<16x128xf32> to vector<16xf32>
    %120 = vector.shape_cast %119 : vector<16xf32> to vector<16x1xf32>
    %cst_59 = arith.constant 1.280000e+02 : f32
    %121 = vector.broadcast %cst_59 : f32 to vector<16x1xf32>
    %122 = arith.divf %120, %121 : vector<16x1xf32>
    %123 = vector.broadcast %115 : vector<16x1xf32> to vector<16x128xf32>
    %124 = arith.subf %107, %123 : vector<16x128xf32>
    %cst_60 = arith.constant 9.99999974E-6 : f32
    %125 = vector.broadcast %cst_60 : f32 to vector<16x1xf32>
    %126 = arith.addf %122, %125 : vector<16x1xf32>
    %127 = math.rsqrt %126 : vector<16x1xf32>
    %128 = vector.broadcast %127 : vector<16x1xf32> to vector<16x128xf32>
    %129 = arith.mulf %124, %128 : vector<16x128xf32>
    %130 = vector.broadcast %109 : vector<1x128xf32> to vector<16x128xf32>
    %131 = arith.mulf %129, %130 : vector<16x128xf32>
    %132 = vector.broadcast %111 : vector<1x128xf32> to vector<16x128xf32>
    %133 = arith.addf %131, %132 : vector<16x128xf32>
    %c0_61 = arith.constant 0 : index
    %c0_62 = arith.constant 0 : index
    %134 = vector.load %arg17[%c0_61, %c0_62] : memref<16x128xf32, #tpu.memory_space<vmem>>, vector<16x128xf32>
    tpu.vector_store %arg17[%c0_61, %c0_62], %133 {strides = array<i32>} : memref<16x128xf32, #tpu.memory_space<vmem>>, vector<16x128xf32>,
    %c1_i32 = arith.constant 1 : i32
    %135 = arith.cmpi eq, %arg1, %c1_i32 : i32
    %136 = arith.extui %135 : i1 to i32
    %c0_i32_63 = arith.constant 0 : i32
    %137 = arith.cmpi ne, %136, %c0_i32_63 : i32
    scf.if %137 {
      %138 = vector.shape_cast %133 : vector<16x128xf32> to vector<2x8x128xf32>
      %139 = arith.truncf %138 : vector<2x8x128xf32> to vector<2x8x128xbf16>
      %c0_64 = arith.constant 0 : index
      %c0_65 = arith.constant 0 : index
      %c0_66 = arith.constant 0 : index
      %140 = vector.load %arg16[%c0_64, %c0_65, %c0_66] : memref<2x8x128xbf16, #tpu.memory_space<vmem>>, vector<2x8x128xbf16>
      tpu.vector_store %arg16[%c0_64, %c0_65, %c0_66], %139 {strides = array<i32>} : memref<2x8x128xbf16, #tpu.memory_space<vmem>>, vector<2x8x128xbf16>,
    } else {
    }
    return
  }
  func.func @transform_0(%arg0: i32, %arg1: i32) -> (i32, i32, i32) {
    %c0_i32 = arith.constant 0 : i32
    %c0_i32_0 = arith.constant 0 : i32
    %c0_i32_1 = arith.constant 0 : i32
    return %arg0, %c0_i32, %c0_i32_0 : i32, i32, i32
  }
  func.func @transform_1(%arg0: i32, %arg1: i32) -> (i32, i32, i32) {
    %c0_i32 = arith.constant 0 : i32
    %c0_i32_0 = arith.constant 0 : i32
    %c0_i32_1 = arith.constant 0 : i32
    return %arg0, %c0_i32, %c0_i32_0 : i32, i32, i32
  }
  func.func @transform_2(%arg0: i32, %arg1: i32) -> (i32, i32, i32) {
    %c0_i32 = arith.constant 0 : i32
    %c0_i32_0 = arith.constant 0 : i32
    %c0_i32_1 = arith.constant 0 : i32
    return %arg1, %c0_i32, %c0_i32_0 : i32, i32, i32
  }
  func.func @transform_3(%arg0: i32, %arg1: i32) -> (i32, i32, i32) {
    %c0_i32 = arith.constant 0 : i32
    %c0_i32_0 = arith.constant 0 : i32
    %c0_i32_1 = arith.constant 0 : i32
    return %arg1, %c0_i32, %c0_i32_0 : i32, i32, i32
  }
  func.func @transform_4(%arg0: i32, %arg1: i32) -> (i32, i32, i32) {
    %c0_i32 = arith.constant 0 : i32
    %c0_i32_0 = arith.constant 0 : i32
    %c0_i32_1 = arith.constant 0 : i32
    return %arg1, %c0_i32, %c0_i32_0 : i32, i32, i32
  }
  func.func @transform_5(%arg0: i32, %arg1: i32) -> (i32, i32, i32) {
    %c0_i32 = arith.constant 0 : i32
    %c0_i32_0 = arith.constant 0 : i32
    %c0_i32_1 = arith.constant 0 : i32
    return %arg1, %c0_i32, %c0_i32_0 : i32, i32, i32
  }
  func.func @transform_6(%arg0: i32, %arg1: i32) -> (i32, i32, i32) {
    %c0_i32 = arith.constant 0 : i32
    %c0_i32_0 = arith.constant 0 : i32
    %c0_i32_1 = arith.constant 0 : i32
    return %arg1, %c0_i32, %c0_i32_0 : i32, i32, i32
  }
  func.func @transform_7(%arg0: i32, %arg1: i32) -> (i32, i32, i32) {
    %c0_i32 = arith.constant 0 : i32
    %c0_i32_0 = arith.constant 0 : i32
    %c0_i32_1 = arith.constant 0 : i32
    return %arg1, %c0_i32, %c0_i32_0 : i32, i32, i32
  }
  func.func @transform_8(%arg0: i32, %arg1: i32) -> (i32, i32, i32) {
    %c0_i32 = arith.constant 0 : i32
    %c0_i32_0 = arith.constant 0 : i32
    %c0_i32_1 = arith.constant 0 : i32
    return %arg1, %c0_i32, %c0_i32_0 : i32, i32, i32
  }
  func.func @transform_9(%arg0: i32, %arg1: i32) -> (i32, i32, i32) {
    %c0_i32 = arith.constant 0 : i32
    %c0_i32_0 = arith.constant 0 : i32
    %c0_i32_1 = arith.constant 0 : i32
    return %arg1, %c0_i32, %c0_i32_0 : i32, i32, i32
  }
  func.func @transform_10(%arg0: i32, %arg1: i32) -> (i32, i32, i32) {
    %c0_i32 = arith.constant 0 : i32
    %c0_i32_0 = arith.constant 0 : i32
    %c0_i32_1 = arith.constant 0 : i32
    return %arg1, %c0_i32, %c0_i32_0 : i32, i32, i32
  }
  func.func @transform_11(%arg0: i32, %arg1: i32) -> (i32, i32, i32) {
    %c0_i32 = arith.constant 0 : i32
    %c0_i32_0 = arith.constant 0 : i32
    %c0_i32_1 = arith.constant 0 : i32
    return %arg1, %c0_i32, %c0_i32_0 : i32, i32, i32
  }
  func.func @transform_12(%arg0: i32, %arg1: i32) -> (i32, i32, i32) {
    %c0_i32 = arith.constant 0 : i32
    %c0_i32_0 = arith.constant 0 : i32
    %c0_i32_1 = arith.constant 0 : i32
    return %arg1, %c0_i32, %c0_i32_0 : i32, i32, i32
  }
  func.func @transform_13(%arg0: i32, %arg1: i32) -> (i32, i32, i32) {
    %c0_i32 = arith.constant 0 : i32
    %c0_i32_0 = arith.constant 0 : i32
    %c0_i32_1 = arith.constant 0 : i32
    return %arg1, %c0_i32, %c0_i32_0 : i32, i32, i32
  }
  func.func @transform_14(%arg0: i32, %arg1: i32) -> (i32, i32, i32) {
    %c0_i32 = arith.constant 0 : i32
    %c0_i32_0 = arith.constant 0 : i32
    %c0_i32_1 = arith.constant 0 : i32
    return %arg0, %c0_i32, %c0_i32_0 : i32, i32, i32
  }
}

</mosaic_0001>

<bundles_post_ra>
// kernel: tpu_custom_call.1
= control target key start
LH: loop header
LB: loop body
LE: loop exit
PB: predicated region body
PF: predicated region fallthrough
CT: control target
= control target key end

     0   :  { %s4722_s0 = inlined_call_operand.hbm [shape: bf16[2,8,128], index: 0, kind: input, shape index: {}]   ;;  %s4723_s1 = inlined_call_operand.vmem [shape: s32[2,1,1], index: 1, kind: input, shape index: {}]   ;;  %s4724_s2 = inlined_call_operand.hbm [shape: bf16[2,128,384], index: 2, kind: input, shape index: {}]   ;;  %s4725_s3 = inlined_call_operand.vmem [shape: f32[2,1,384], index: 3, kind: input, shape index: {}]   ;;  %s4726_s4 = inlined_call_operand.hbm [shape: bf16[2,128,128], index: 4, kind: input, shape index: {}]   ;;  %s4727_s5 = inlined_call_operand.vmem [shape: f32[2,1,128], index: 5, kind: input, shape index: {}]   ;;  %s4728_s6 = inlined_call_operand.vmem [shape: f32[2,1,128], index: 6, kind: input, shape index: {}]   ;;  %s4729_s7 = inlined_call_operand.vmem [shape: f32[2,1,128], index: 7, kind: input, shape index: {}]   ;;  %s4730_s8 = inlined_call_operand.hbm [shape: bf16[2,128,256], index: 8, kind: input, shape index: {}]   ;;  %s4731_s9 = inlined_call_operand.vmem [shape: f32[2,1,256], index: 9, kind: input, shape index: {}]   ;;  %s4732_s10 = inlined_call_operand.hbm [shape: bf16[2,256,128], index: 10, kind: input, shape index: {}]   ;;  %s4733_s11 = inlined_call_operand.vmem [shape: f32[2,1,128], index: 11, kind: input, shape index: {}]   ;;  %s4734_s12 = inlined_call_operand.vmem [shape: f32[2,1,128], index: 12, kind: input, shape index: {}]   ;;  %s4735_s13 = inlined_call_operand.vmem [shape: f32[2,1,128], index: 13, kind: input, shape index: {}]   ;;  %s4736_s14 = inlined_call_operand.hbm [shape: bf16[2,8,128], index: 14, kind: output, shape index: {}]  }
   0x1   :  { %4751 = sst [smem:[#allocation23_spill]] %s4722_s0 }
   0x2   :  { %4752 = sst [smem:[#allocation24_spill]] %s4723_s1 }
   0x3   :  { %4753 = sst [smem:[#allocation25_spill]] %s4724_s2 }
   0x4   :  { %4754 = sst [smem:[#allocation26_spill]] %s4725_s3 }
   0x5   :  { %4755 = sst [smem:[#allocation27_spill]] %s4726_s4 }
   0x6   :  { %4756 = sst [smem:[#allocation28_spill]] %s4730_s8 }
   0x7   :  { %4757 = sst [smem:[#allocation29_spill]] %s4731_s9 }
   0x8   :  { %4758 = sst [smem:[#allocation30_spill]] %s4732_s10 }
   0x9   :  { %4759 = sst [smem:[#allocation31_spill]] %s4733_s11 }
   0xa   :  { %4760 = sst [smem:[#allocation32_spill]] %s4734_s12 }
   0xb   :  { %4761 = sst [smem:[#allocation33_spill]] %s4735_s13 }
   0xc   :  { %4762 = sst [smem:[#allocation34_spill]] %s4736_s14 }
   0xd   :  { %19 = vsyncpa [#allocation4], 0 }
   0xe   :  { %20 = vsyncpa [#allocation7], 0 }
   0xf   :  { %22 = vsyncpa [#allocation7 + $0x1], 0 }
  0x10   :  { %23 = vsyncpa [#allocation10], 0 }
  0x11   :  { %25 = vsyncpa [#allocation10 + $0x1], 0 }
  0x12   :  { %26 = vsyncpa [#allocation5], 0  ;;  %s4000_s29 = smov 0   ;;  %s4002_s30 = smov 0  }
  0x13   :  { %s4004_s15 = smov 0   ;;  %s4006_s16 = smov 0  }
  0x14   :  { %s4008_s17 = smov 0   ;;  %s4010_s18 = smov 0  }
  0x15 LB: > { %4763 = sst [smem:[#allocation17_spill]] %s3888_s30  ;;  %s41_s19 = sadd.s32 1, %s3900_s17  ;;  %s3904_s18 = sphi %s4010_s18, %s32_s18   ;;  %s3900_s17 = sphi %s4008_s17, %s4806_s17   ;;  %s3896_s16 = sphi %s4006_s16, %s4805_s16   ;;  %s3892_s15 = sphi %s4004_s15, %s4804_s15   ;;  %s3888_s30 = sphi %s4002_s30, %s4803_s30   ;;  %s3884_s29 = sphi %s4000_s29, %s4802_s29  }
  0x16   : > { %4764 = sst [smem:[#allocation18_spill]] %s3892_s15  ;;  %s103_s20 = sadd.s32 1, %s3892_s15 }
  0x17   : > { %4765 = sst [smem:[#allocation19_spill]] %s3900_s17  ;;  %p42_p0 = scmp.ge.s32.totalorder %s41_s19, 2 }
  0x18   : > { %4766 = sst [smem:[#allocation20_spill]] %s3904_s18  ;;  %p110_p1 = scmp.ne.s32.totalorder %s3892_s15, %s3888_s30 }
  0x19   : > { %p111_p2 = scmp.eq.s32.totalorder %s3904_s18, 0  ;;  %s4808_s19 = smov (%p42_p0, %s41_s19), 0 }
  0x1a   : > { %4767 = sst [smem:[#allocation21_spill]] %s4808_s19  ;;  %p3488_p4 = scmp.lt.s32.totalorder %s3904_s18, 2 }
  0x1b   : > { %p112_p3 = por %p111_p2, %p110_p1  ;;  %s100_s21 = ssub.s32 %s3900_s17, %s4808_s19 }
  0x1c   : > { %p101_p5 = scmp.eq.s32.totalorder %s100_s21, 0  ;;  %s4042_s23 = sand.u32 1, %s3892_s15  }
  0x1d   : > { %s3451_s24 = smul.u32 3072, %s3900_s17  ;;  %s4769_s2 = sld [smem:[#allocation25_spill]] }
  0x1e   : > { %s4046_s25 = scalar_select %p101_p5, %s3892_s15, %s103_s20  }
  0x1f   : > { %s3450_s26 = smul.u32 192, %s4042_s23  ;;  %p4054_p6 = pnand %p3488_p4, %p112_p3 }
  0x20   : > { %4768 = sst [smem:[#allocation22_spill]] %s4046_s25  ;;  %s4771_s20 = sand.u32 1, %s3904_s18  }
  0x21   : > { %s4770_s19 = scalar_select %p4054_p6, 1, 0 }
  0x22   : > { %s480_s21 = scalar_lea.vmem [#allocation6], %s3450_s26  ;;  %s4062_s25 = scalar_lea.sflag [#allocation7], %s4771_s20 }
  0x23   : > { %s4052_s14 = scalar_lea.hbm %s4769_s2, %s3451_s24  ;;  %s487_s22 = sshll.u32 %s480_s21, 4  ;;  %s4058_s22 = int_to_ptr.vmem [resolvable:$true] %s487_s22 }
  0x24   : > { %s3668_s15 = scalar_lea.hbm %s4052_s14, 3072  ;;  %p4068_p8 = pneg %p4054_p6 }
  0x25   : > { %p3669_p7 = scmp.ne.s32.totalorder %s4052_s14, %s3668_s15  ;;  %s3673_s26 = scalar_lea.hbm %s4769_s2, 6144 }
  0x26   : > { %s4772_s24 = scalar_select %p4068_p8, 1, 0 }
  0x27   : > { %p3671_p9 = pnand %p4068_p8, %p3669_p7  ;;  %p3674_p11 = scmp.lt.u32.totalorder %s4052_s14, %s4769_s2 }
  0x28   : > { %p3675_p12 = scmp.lt.u32.totalorder %s3673_s26, %s3668_s15  ;;  %p3677_p0 = scmp.lt.u32.totalorder %s3668_s15, %s4052_s14 }
  0x29   : > { %p3672_p10 = pneg %p3671_p9 }
  0x2a   : > { %p3676_p13 = por %p3675_p12, %p3674_p11 }
  0x2c   : > { %p3678_p1 = por %p3677_p0, %p3676_p13 }
  0x2e   : > { %p3679_p2 = pnand %p3678_p1, %p3672_p10 }
  0x30   : > { %3682 = shalt.err (!%p3679_p2)
}
  0x31   : > { %s3683_s20 = scalar_lea.vmem %s4058_s22, 3072  ;;  %s3906_s27 = smov [#allocation6]  }
  0x32   : > { %p3684_p3 = scmp.ne.s32.totalorder %s4058_s22, %s3683_s20  ;;  %s3688_s28 = sshll.u32 %s3906_s27, 4  ;;  %s3689_s28 = int_to_ptr.vmem [resolvable:$false] %s3688_s28 }
  0x33   : > { %s3690_s1 = scalar_lea.vmem %s3689_s28, 6144  ;;  %p3691_p7 = scmp.lt.s32.totalorder %s4058_s22, %s3689_s28 }
  0x34   : > { %p3686_p4 = pnand %p3684_p3, %p4068_p8  ;;  %p3692_p9 = scmp.lt.s32.totalorder %s3690_s1, %s3683_s20 }
  0x36   : > { %p3687_p5 = pneg %p3686_p4  ;;  %p3693_p11 = por %p3692_p9, %p3691_p7 }
  0x38   : > { %p3694_p12 = pnand %p3693_p11, %p3687_p5 }
  0x3a   : > { %3697 = shalt.err (!%p3694_p12)
}
  0x3b   : > { %s3907_s15 = smov 192   ;;  %s3908_s26 = smov 12  }
  0x3c   : > { %3477 = dma.hbm_to_vmem [thread:$0]  (!%p4054_p6), %s4052_s14, 3072, %s4058_s22, %s4062_s25, %s3907_s15, %s3907_s15, %s3908_s26  }
  0x3d   : > { %s3182_s21 = sshll.u32 %s4042_s23, 7  ;;  %s3295_s27 = sshll.u32 %s3900_s17, 11 }
  0x3e   : > { %s4773_s8 = sld [smem:[#allocation28_spill]]  ;;  %s547_s2 = scalar_lea.vmem [#allocation9], %s3182_s21 }
  0x3f   : > { %s554_s13 = sshll.u32 %s547_s2, 4  ;;  %s4774_s12 = sand.u32 1, %s3904_s18   ;;  %s4103_s13 = int_to_ptr.vmem [resolvable:$true] %s554_s13 }
  0x40   : > { %s4107_s11 = scalar_lea.sflag [#allocation10], %s4774_s12 }
  0x44   : > { %s4099_s1 = scalar_lea.hbm %s4773_s8, %s3295_s27  ;;  %s3703_s26 = scalar_lea.hbm %s4773_s8, 4096 }
  0x45   : > { %s3698_s14 = scalar_lea.hbm %s4099_s1, 2048  ;;  %p3704_p1 = scmp.lt.u32.totalorder %s4099_s1, %s4773_s8 }
  0x46   : > { %p3699_p10 = scmp.ne.s32.totalorder %s4099_s1, %s3698_s14  ;;  %p3705_p2 = scmp.lt.u32.totalorder %s3703_s26, %s3698_s14 }
  0x47   : > { %p3707_p4 = scmp.lt.u32.totalorder %s3698_s14, %s4099_s1 }
  0x48   : > { %p3701_p13 = pnand %p3699_p10, %p4068_p8  ;;  %p3706_p3 = por %p3705_p2, %p3704_p1 }
  0x4a   : > { %p3702_p0 = pneg %p3701_p13  ;;  %p3708_p5 = por %p3707_p4, %p3706_p3 }
  0x4c   : > { %p3709_p7 = pnand %p3708_p5, %p3702_p0 }
  0x4e   : > { %3712 = shalt.err (!%p3709_p7)
}
  0x4f   : > { %s3713_s2 = scalar_lea.vmem %s4103_s13, 2048  ;;  %s3909_s12 = smov [#allocation9]  }
  0x50   : > { %p3714_p9 = scmp.ne.s32.totalorder %s4103_s13, %s3713_s2  ;;  %s3718_s22 = sshll.u32 %s3909_s12, 4  ;;  %s3719_s22 = int_to_ptr.vmem [resolvable:$false] %s3718_s22 }
  0x51   : > { %s3720_s15 = scalar_lea.vmem %s3719_s22, 4096  ;;  %p3721_p10 = scmp.lt.s32.totalorder %s4103_s13, %s3719_s22 }
  0x52   : > { %p3716_p11 = pnand %p3714_p9, %p4068_p8  ;;  %p3722_p13 = scmp.lt.s32.totalorder %s3720_s15, %s3713_s2 }
  0x54   : > { %p3717_p12 = pneg %p3716_p11  ;;  %p3723_p1 = por %p3722_p13, %p3721_p10 }
  0x56   : > { %p3724_p2 = pnand %p3723_p1, %p3717_p12 }
  0x58   : > { %3727 = shalt.err (!%p3724_p2)
}
  0x59   : > { %s3910_s14 = smov 128   ;;  %s3911_s26 = smov 8  }
  0x5a   : > { %3483 = dma.hbm_to_vmem [thread:$0]  (!%p4054_p6), %s4099_s1, 2048, %s4103_s13, %s4107_s11, %s3910_s14, %s3910_s14, %s3911_s26  }
  0x5b   : > { %s4775_s10 = sld [smem:[#allocation30_spill]]  ;;  %s575_s12 = scalar_lea.vmem [#allocation11], %s3182_s21 }
  0x5c   : > { %s582_s22 = sshll.u32 %s575_s12, 4  ;;  %s4143_s15 = sadd.s32 4294967295, %s3904_s18   ;;  %s4140_s22 = int_to_ptr.vmem [resolvable:$true] %s582_s22 }
  0x5d   : > { %p116_p0 = scmp.ne.s32.totalorder %s3888_s30, %s3884_s29  ;;  %p4743_p3 = scmp.eq.s32.totalorder %s4143_s15, 0 }
  0x5e   : > { %p3174_p4 = scmp.ge.s32.totalorder %s3904_s18, 1  ;;  %p439_p5 = scmp.lt.s32.totalorder %s3904_s18, 3 }
  0x5f   : > { %p4152_p7 = por %p4743_p3, %p116_p0  ;;  %s3912_s21 = smov [#allocation3]  }
  0x60   : > { %p4156_p9 = pnand %p3174_p4, %p439_p5  ;;  %s454_s1 = sshll.u32 %s3912_s21, 4  ;;  %s4160_s1 = int_to_ptr.vmem [resolvable:$true] %s454_s1 }
  0x61   : > { %s4136_s2 = scalar_lea.hbm %s4775_s10, %s3295_s27  ;;  %s3179_s29 = sshll.u32 %s4042_s23, 6 }
  0x62   : > { %s4776_s13 = scalar_select %p4152_p7, 1, 0 }
  0x63   : > { %s4777_s27 = scalar_select %p4156_p9, 1, 0 }
  0x64   : > { %p3470_p11 = pneg %p4156_p9  ;;  %s3294_s14 = sshll.u32 %s3900_s17, 10 }
  0x65   : > { %s4779_s4 = sld [smem:[#allocation27_spill]]  ;;  %s508_s8 = scalar_lea.vmem [#allocation8], %s3179_s29 }
  0x66   : > { %p4168_p12 = pnand %p3470_p11, %p4743_p3  ;;  %s515_s18 = sshll.u32 %s508_s8, 4  ;;  %s4177_s18 = int_to_ptr.vmem [resolvable:$true] %s515_s18 }
  0x67   : > { %s4780_s0 = sld [smem:[#allocation23_spill]] }
  0x68   : > { %p3730_p13 = pneg %p4168_p12 }
  0x6b   : > { %s4175_s12 = scalar_lea.hbm %s4779_s4, %s3294_s14 }
  0x6d   : > { %s3728_s23 = scalar_lea.hbm %s4780_s0, 128 }
  0x6e   : > { %p3729_p10 = scmp.ne.s32.totalorder %s4780_s0, %s3728_s23  ;;  %p3735_p0 = scmp.lt.u32.totalorder %s3728_s23, %s4780_s0 }
  0x70   : > { %p3731_p1 = pnand %p3730_p13, %p3729_p10 }
  0x72   : > { %p3732_p2 = pneg %p3731_p1 }
  0x74   : > { %p3737_p4 = pnand %p3735_p0, %p3732_p2 }
  0x76   : > { %3740 = shalt.err (!%p3737_p4)
}
  0x77   : > { %s3741_s8 = scalar_lea.vmem %s4160_s1, 128  ;;  %p3749_p7 = scmp.lt.s32.totalorder %s4160_s1, %s4160_s1 }
  0x78   : > { %p3742_p5 = scmp.ne.s32.totalorder %s4160_s1, %s3741_s8  ;;  %p3750_p9 = scmp.lt.s32.totalorder %s3741_s8, %s3741_s8 }
  0x7a   : > { %p3744_p11 = pnand %p3742_p5, %p3730_p13  ;;  %p3751_p6 = por %p3750_p9, %p3749_p7 }
  0x7c   : > { %p3745_p3 = pneg %p3744_p11 }
  0x7e   : > { %p3752_p8 = pnand %p3751_p6, %p3745_p3 }
  0x80   : > { %3755 = shalt.err (!%p3752_p8)
}
  0x81   : > { %s3913_s3 = smov 64   ;;  %s3914_s9 = smov 4  }
  0x82   : > { %3473 = dma.hbm_to_vmem [thread:$0]  (!%p4168_p12), %s4780_s0, 128, %s4160_s1, [#allocation4], %s3913_s3, %s3913_s3, %s3914_s9  }
  0x83   : > { %s3756_s14 = scalar_lea.hbm %s4175_s12, 1024  ;;  %p4781_p8 = scmp.ne.s32.totalorder %s4772_s24, 0 }
  0x84   : > { %p3757_p6 = scmp.ne.s32.totalorder %s4175_s12, %s3756_s14  ;;  %s3761_s20 = scalar_lea.hbm %s4779_s4, 2048 }
  0x85   : > { %p3762_p9 = scmp.lt.u32.totalorder %s4175_s12, %s4779_s4  ;;  %p3763_p10 = scmp.lt.u32.totalorder %s3761_s20, %s3756_s14 }
  0x86   : > { %p3759_p3 = pnand %p3757_p6, %p4781_p8  ;;  %p3765_p1 = scmp.lt.u32.totalorder %s3756_s14, %s4175_s12 }
  0x87   : > { %p3764_p13 = por %p3763_p10, %p3762_p9 }
  0x88   : > { %p3760_p7 = pneg %p3759_p3 }
  0x89   : > { %p3766_p2 = por %p3765_p1, %p3764_p13 }
  0x8b   : > { %p3767_p0 = pnand %p3766_p2, %p3760_p7 }
  0x8d   : > { %3770 = shalt.err (!%p3767_p0)
}
  0x8e   : > { %s3771_s1 = scalar_lea.vmem %s4177_s18, 1024  ;;  %s3915_s26 = smov [#allocation8]  }
  0x8f   : > { %p3772_p12 = scmp.ne.s32.totalorder %s4177_s18, %s3771_s1  ;;  %s3776_s17 = sshll.u32 %s3915_s26, 4  ;;  %s3777_s17 = int_to_ptr.vmem [resolvable:$false] %s3776_s17 }
  0x90   : > { %s3778_s29 = scalar_lea.vmem %s3777_s17, 2048  ;;  %p3779_p11 = scmp.lt.s32.totalorder %s4177_s18, %s3777_s17 }
  0x91   : > { %p3774_p4 = pnand %p3772_p12, %p4781_p8  ;;  %p3780_p6 = scmp.lt.s32.totalorder %s3778_s29, %s3771_s1 }
  0x93   : > { %p3775_p5 = pneg %p3774_p4  ;;  %p3781_p3 = por %p3780_p6, %p3779_p11 }
  0x95   : > { %p3782_p9 = pnand %p3781_p3, %p3775_p5 }
  0x97   : > { %3785 = shalt.err (!%p3782_p9)
}
  0x98   : > { %p4782_p7 = scmp.ne.s32.totalorder %s4770_s19, 0  ;;  %s3786_s14 = scalar_lea.hbm %s4136_s2, 2048 }
  0x99   : > { %p3787_p10 = scmp.ne.s32.totalorder %s4136_s2, %s3786_s14  ;;  %s3791_s20 = scalar_lea.hbm %s4775_s10, 4096 }
  0x9a   : > { %3480 = dma.hbm_to_vmem [thread:$0]  (!%p4782_p7), %s4175_s12, 1024, %s4177_s18, %s4062_s25, %s3913_s3, %s3913_s3, %s3914_s9  }
  0x9b   : > { %p3789_p13 = pnand %p3787_p10, %p4781_p8  ;;  %p3792_p2 = scmp.lt.u32.totalorder %s4136_s2, %s4775_s10 }
  0x9c   : > { %p3793_p0 = scmp.lt.u32.totalorder %s3791_s20, %s3786_s14  ;;  %p3795_p4 = scmp.lt.u32.totalorder %s3786_s14, %s4136_s2 }
  0x9d   : > { %p3790_p1 = pneg %p3789_p13 }
  0x9e   : > { %p3794_p12 = por %p3793_p0, %p3792_p2 }
  0xa0   : > { %p3796_p5 = por %p3795_p4, %p3794_p12 }
  0xa2   : > { %p3797_p11 = pnand %p3796_p5, %p3790_p1 }
  0xa4   : > { %3800 = shalt.err (!%p3797_p11)
}
  0xa5   : > { %s3801_s18 = scalar_lea.vmem %s4140_s22, 2048  ;;  %s3916_s25 = smov [#allocation11]  }
  0xa6   : > { %p3802_p6 = scmp.ne.s32.totalorder %s4140_s22, %s3801_s18  ;;  %s3806_s12 = sshll.u32 %s3916_s25, 4  ;;  %s3807_s12 = int_to_ptr.vmem [resolvable:$false] %s3806_s12 }
  0xa7   : > { %s3808_s1 = scalar_lea.vmem %s3807_s12, 4096  ;;  %p3809_p10 = scmp.lt.s32.totalorder %s4140_s22, %s3807_s12 }
  0xa8   : > { %p3804_p3 = pnand %p3802_p6, %p4781_p8  ;;  %p3810_p13 = scmp.lt.s32.totalorder %s3808_s1, %s3801_s18 }
  0xaa   : > { %p3805_p9 = pneg %p3804_p3  ;;  %p3811_p2 = por %p3810_p13, %p3809_p10 }
  0xac   : > { %p3812_p0 = pnand %p3811_p2, %p3805_p9 }
  0xae   : > { %3815 = shalt.err (!%p3812_p0)
}
  0xaf   : > { %3486 = dma.hbm_to_vmem [thread:$0]  (!%p4782_p7), %s4136_s2, 2048, %s4140_s22, %s4107_s11, %s3913_s3, %s3913_s3, %s3914_s9  }
  0xb0   : > { %p4783_p8 = scmp.ne.s32.totalorder %s4777_s27, 0 }
  0xb1   : > { %p4784_p1 = scmp.eq.s32.totalorder (!%p4783_p8), %s4143_s15, 0 }
  0xb2   : > { %612 = sbr.rel (%p4783_p8) target bundleno = 2834 (0xb12), region = 76 }
  0xb9   : > { %3867 = dma.done.wait (%p4784_p1), [#allocation4], 128   ;;  %p4785_p12 = pmov %p4784_p1 }
  0xba   : > { %s618_s19 = sand.u32 1, %s4143_s15   ;;  %s620_s24 = sand.u32 1, %s3888_s30  }
  0xbb   : > { %3869 = vsyncadd (%p4785_p12), [#allocation4], 4294967168  ;;  %s3452_s26 = smul.u32 192, %s620_s24  ;;  %s619_s17 = scalar_lea.sflag [#allocation7], %s618_s19 }
  0xbc   : > { %p4786_p4 = scmp.ne.s32.totalorder %s4776_s13, 0 }
  0xbd   : > { %s4261_s29 = scalar_lea.vmem [#allocation6], %s3452_s26 }
  0xbe   : > { %3871 = dma.done.wait (%p4786_p4), %s619_s17, 4096  }
  0xbf   : > { %3873 = vsyncadd (%p4786_p4), %s619_s17, 4294963200  ;;  %s3190_s11 = sshll.u32 %s620_s24, 6  ;;  %s3191_s2 = sshll.u32 %s620_s24, 7 }
  0xc0   : > { %s4267_s22 = scalar_lea.vmem [#allocation8], %s3190_s11  ;;  %s637_s27 = scalar_lea.sflag [#allocation10], %s618_s19 }
  0xc1   : > { %s4269_s3 = scalar_lea.vmem [#allocation9], %s3191_s2 }
  0xc2   : > { %3875 = dma.done.wait (%p4786_p4), %s637_s27, 4096  }
  0xc3   : > { %3877 = vsyncadd (%p4786_p4), %s637_s27, 4294963200  ;;  %p740_p7 = scmp.lt.s32.totalorder %s3896_s16, 1  ;;  %s4787_s24 = sld [smem:[#allocation26_spill]] }
  0xc4   : > { %s4788_s0 = sld [smem:[#allocation29_spill]]  ;;  %s4789_s20 = sld [smem:[#allocation31_spill]] }
  0xc5   : > { %s4277_s9 = scalar_select %p740_p7, %s3896_s16, 1 }
  0xc6   : > { %s4790_s10 = sld [smem:[#allocation32_spill]]  ;;  %s4791_s30 = sld [smem:[#allocation33_spill]] }
  0xc7   : > { %s3453_s14 = smul.u32 3, %s4277_s9  ;;  %s3193_s17 = sshll.u32 %s4277_s9, 1 }
  0xc8   : > { %p3194_p5 = scmp.ne.s32.totalorder %s3896_s16, 0 }
  0xc9   : > { %s4295_s26 = scalar_lea.vmem %s4787_s24, %s3453_s14  ;;  %s4315_s14 = scalar_lea.vmem [#allocation11], %s3191_s2  ;;  %v3298_v0 = vld [vmem:[#allocation3] sm:$0xff] (!%p3194_p5)  }
  0xca   : > { %s4301_s4 = scalar_lea.vmem %s4788_s0, %s3193_s17  ;;  %s759_s13 = scalar_lea.vmem %s4789_s20, %s4277_s9  ;;  %v3299_v1 = vunpack.c.l.bf16 (!%p3194_p5), %v3298_v0  ;;  %v3300_v2 = vunpack.c.h.bf16 (!%p3194_p5), %v3298_v0 }
  0xcb   : > { %771 = sbr.rel (%p3194_p5) target bundleno = 210 (0xd2), region = 100 }
  0xcc   : > { %s762_s18 = scalar_lea.vmem %s4790_s10, %s4277_s9  ;;  %s765_s1 = scalar_lea.vmem %s4791_s30, %s4277_s9  ;;  %776 = vst [vmem:[#allocation2] sm:$0xff] (!%p3194_p5), %v3299_v1  ;;  %777 = vst [vmem:[#allocation2 + $0x8] sm:$0xff] (!%p3194_p5), %v3300_v2 }
  0xd2 PF: > { %v3562_v3 = vld [vmem:[%s4261_s29 + $0x4] ss:$12 sps:$4 sm:$0xff]   ;;  %v3564_v4 = vld [vmem:[%s4261_s29] ss:$12 sps:$4 sm:$0xff]   ;;  %v3917_v5 = vmov 0   ;;  %v3918_v24 = vmov 0.0   ;;  %v815_v28 = vlaneseq  ;;  %s4793_s12 = scalar_lea.vmem %s4727_s5, %s4277_s9  ;;  %s4794_s24 = scalar_lea.vmem %s4728_s6, %s4277_s9 }
  0xd3   : > { %990 = vmatprep.mubr.bf16.mxu0 %v3917_v5  ;;  %3555 = vset.pattern.permute.xlu1 %v3917_v5  ;;  %v3565_v6 = vld [vmem:[%s4261_s29 + $0x1c] ss:$12 sps:$4 sm:$0xff]   ;;  %v3567_v7 = vld [vmem:[%s4261_s29 + $0x18] ss:$12 sps:$4 sm:$0xff]   ;;  %v3568_v8 = vld [vmem:[%s4261_s29 + $0x34] ss:$12 sps:$4 sm:$0xff]   ;;  %v4392_v63 = vpack.i.b16 %v3917_v5, %v3917_v5  ;;  %s4795_s11 = scalar_lea.vmem %s4729_s7, %s4277_s9 }
  0xd4   : > { %958 = vmatprep.subr.bf16.mxu0 %v3562_v3  ;;  %3561 = vset.pattern.permute.xlu0 %v3917_v5  ;;  %v3570_v9 = vld [vmem:[%s4261_s29 + $0x30] ss:$12 sps:$4 sm:$0xff]   ;;  %v3571_v10 = vld [vmem:[%s4261_s29 + $0x4c] ss:$12 sps:$4 sm:$0xff]   ;;  %v3573_v11 = vld [vmem:[%s4261_s29 + $0x48] ss:$12 sps:$4 sm:$0xff]  }
  0xd5   : > { %959 = vmatpush1.bf16.msra.mxu0 %v3564_v4  ;;  %v3574_v12 = vld [vmem:[%s4261_s29 + $0x64] ss:$12 sps:$4 sm:$0xff]   ;;  %v3576_v13 = vld [vmem:[%s4261_s29 + $0x60] ss:$12 sps:$4 sm:$0xff]   ;;  %v3577_v14 = vld [vmem:[%s4261_s29 + $0x7c] ss:$12 sps:$4 sm:$0xff]   ;;  %3362 = vmatprep.subr.bf16.mxu1 %v3918_v24 }
  0xd6   : > { %960 = vmatprep.subr.bf16.mxu0 %v3565_v6  ;;  %v3579_v15 = vld [vmem:[%s4261_s29 + $0x78] ss:$12 sps:$4 sm:$0xff]   ;;  %v3580_v16 = vld [vmem:[%s4261_s29 + $0x94] ss:$12 sps:$4 sm:$0xff]   ;;  %v3582_v17 = vld [vmem:[%s4261_s29 + $0x90] ss:$12 sps:$4 sm:$0xff]  }
  0xd7   : > { %v3583_v18 = vld [vmem:[%s4261_s29 + $0xac] ss:$12 sps:$4 sm:$0xff]   ;;  %v3585_v19 = vld [vmem:[%s4261_s29 + $0xa8] ss:$12 sps:$4 sm:$0xff]   ;;  %v3589_v27 = vld [vmem:[%s4261_s29 + $0x50] ss:$12 sps:$4 sm:$0xff]  }
  0xd8   : > { %v778_v20 = vld [vmem:[#allocation2] sm:$0xff]  ;;  %v779_v21 = vld [vmem:[#allocation2 + $0x8] sm:$0xff]  ;;  %v3588_v26 = vld [vmem:[%s4261_s29 + $0x38] ss:$12 sps:$4 sm:$0xff]   ;;  %v4348_v29 = vshrl.u32 %v815_v28, 7  ;;  %s3919_s0 = smov 64  }
  0xd9   : > { %961 = vmatpush1.bf16.msra.mxu0 %v3567_v7  ;;  %v780_v22 = vpack.c.bf16 %v779_v21, %v778_v20  ;;  %v3586_v23 = vld [vmem:[%s4261_s29 + $0x8] ss:$12 sps:$4 sm:$0xff]   ;;  %v3587_v25 = vld [vmem:[%s4261_s29 + $0x20] ss:$12 sps:$4 sm:$0xff]   ;;  %v3592_v47 = vld [vmem:[%s4261_s29 + $0x98] ss:$12 sps:$4 sm:$0xff]  }
  0xda   : > { %962 = vmatprep.subr.bf16.mxu0 %v3568_v8  ;;  %3363 = vmatpush3.bf16.msra.mxu1 %v3586_v23  ;;  %v3590_v30 = vld [vmem:[%s4261_s29 + $0x68] ss:$12 sps:$4 sm:$0xff]   ;;  %v4352_v31 = vsub.s32 0, %v4348_v29  ;;  %v821_v33 = vsub.s32 1, %v4348_v29  ;;  %v3591_v39 = vld [vmem:[%s4261_s29 + $0x80] ss:$12 sps:$4 sm:$0xff]  }
  0xdb   : > { %3364 = vmatprep.subr.bf16.mxu1 %v3918_v24  ;;  %v4355_v32 = vld [vmem:[%s4295_s26] sm:$0x7]  ;;  %v3593_v48 = vld [vmem:[%s4261_s29 + $0xb0] ss:$12 sps:$4 sm:$0xff]   ;;  %vm3920_vm0 = vmmov 0   ;;  %s4792_s2 = sld [smem:[#allocation24_spill]] }
  0xdc   : > { %v818_v34 = vrot.slane %v4355_v32, %v4352_v31  ;;  %v822_v36 = vrot.slane %v4355_v32, %v821_v33  ;;  %3378 = vmatprep.mubr.msk.bf16.mxu1 %vm3920_vm0, %v3918_v24  ;;  %v3921_v51 = vmov 1983009808   ;;  %v3922_v54 = vmov 1934713408   ;;  %p3289_p11 = scmp.ne.s32.totalorder %s3896_s16, 1 }
  0xdd   : > { %963 = vmatpush1.bf16.msra.mxu0 %v3570_v9  ;;  %v1064_v52 = vunpack.c.l.s4 %v3921_v51  ;;  %v1079_v55 = vunpack.c.l.s4 %v3922_v54  ;;  %vm1702_vm1 = vcmask 523264   ;;  %vm1915_vm3 = vcmask 64512  }
  0xde   : > { %964 = vmatprep.subr.bf16.mxu0 %v3571_v10  ;;  %3365 = vmatpush3.bf16.msra.mxu1 %v3587_v25  ;;  %vm1967_vm5 = vcmask 1043456  }
  0xdf   : > { %3366 = vmatprep.subr.bf16.mxu1 %v3918_v24  ;;  %v1065_v53 = vunpack.c.0.s8 %v1064_v52  ;;  %v1080_v57 = vunpack.c.0.s8 %v1079_v55 }
  0xe1   : > { %965 = vmatpush1.bf16.msra.mxu0 %v3573_v11  ;;  %v1889_v49 = vld [vmem:[%s4792_s2] sm:$0x1]  ;;  %v1890_v50 = vld [vmem:[%s4792_s2 + $0x1] sm:$0x1]  ;;  %v4385_v56 = vsub.s32 %v1065_v53, %v4348_v29  ;;  %v4388_v62 = vsub.s32 %v1080_v57, %v4348_v29 }
  0xe2   : > { %966 = vmatprep.subr.bf16.mxu0 %v3574_v12  ;;  %3367 = vmatpush3.bf16.msra.mxu1 %v3588_v26 }
  0xe3   : > { %3368 = vmatprep.subr.bf16.mxu1 %v3918_v24  ;;  %1892 = vperm.xlu1 %3555, %v1889_v49  }
  0xe5   : > { %967 = vmatpush1.bf16.msra.mxu0 %v3576_v13 }
  0xe6   : > { %968 = vmatprep.subr.bf16.mxu0 %v3577_v14  ;;  %3369 = vmatpush3.bf16.msra.mxu1 %v3589_v27 }
  0xe7   : > { %3370 = vmatprep.subr.bf16.mxu1 %v3918_v24  ;;  %1899 = vperm.xlu1 %3555, %v1890_v50  }
  0xe9   : > { %969 = vmatpush1.bf16.msra.mxu0 %v3579_v15 }
  0xea   : > { %970 = vmatprep.subr.bf16.mxu0 %v3580_v16  ;;  %3371 = vmatpush3.bf16.msra.mxu1 %v3590_v30 }
  0xeb   : > { %3372 = vmatprep.subr.bf16.mxu1 %v3918_v24 }
  0xed   : > { %971 = vmatpush1.bf16.msra.mxu0 %v3582_v17 }
  0xee   : > { %972 = vmatprep.subr.bf16.mxu0 %v3583_v18  ;;  %3373 = vmatpush3.bf16.msra.mxu1 %v3591_v39 }
  0xef   : > { %3374 = vmatprep.subr.bf16.mxu1 %v3918_v24 }
  0xf1   : > { %973 = vmatpush1.bf16.msra.mxu0 %v3585_v19 }
  0xf2   : > { %3406 = vmatprep.subr.bf16.mxu0 %v3918_v24  ;;  %3375 = vmatpush3.bf16.msra.mxu1 %v3592_v47 }
  0xf3   : > { %3376 = vmatprep.subr.bf16.mxu1 %v3918_v24 }
  0xf4   : > { %991 = vmatmul.mubr.bf16.vlgmr.msra.gmra.mrb[0].mxu0 %v780_v22 }
  0xf5   : > { %3408 = vmatprep.mubr.msk.bf16.mxu0 %vm3920_vm0, %v3918_v24 }
  0xf6   : > { %3377 = vmatpush3.bf16.msra.mxu1 %v3593_v48 }
  0xf7   : > { %3382 = vmatprep.subr.bf16.mxu1 %v3918_v24 }
  0xf9   : > { %3379 = vmatmul.mubr.bf16.vlgmr.msra.gmra.mrb[0].mxu1 %v780_v22 }
  0xfa   : > { %3384 = vmatprep.mubr.msk.bf16.mxu1 %vm3920_vm0, %v3918_v24 }
 0x1c7   : > { %v992_v35 = vpop.f32.mrb[0].mxu0 }
 0x1c8   : > { %v994_v37 = vpop.f32.mrb[1].mxu0  ;;  %v993_v40 = vadd.f32 %v992_v35, %v818_v34 }
 0x1c9   : > { %v996_v38 = vpop.f32.mrb[2].mxu0  ;;  %v995_v43 = vadd.f32 %v994_v37, %v822_v36 }
 0x1ca   : > { %v997_v41 = vadd.f32 %v996_v38, %v818_v34  ;;  %v998_v42 = vpop.f32.mrb[3].mxu0 }
 0x1cb   : > { %v999_v44 = vadd.f32 %v998_v42, %v822_v36 }
 0x1cc   : > { %v1042_v45 = vpack.c.bf16 %v997_v41, %v993_v40 }
 0x1cd   : > { %v1043_v46 = vpack.c.bf16 %v999_v44, %v995_v43 }
 0x1ce   : > { %v1052_v14 = vshrl.u32 %v1042_v45, 16 }
 0x1cf   : > { %1269 = vrot.lane.b32.xlu0 %v1043_v46, %s3919_s0  ;;  %v1275_v60 = vshrl.u32 %v1043_v46, 16 }
 0x1d3   : > { %1046 = vrot.lane.b32.xlu0 %v1042_v45, %s3919_s0 }
 0x241   : > { %v1270_v58 = vpop.permute.xlu0 %1269 }
 0x242   : > { %v1273_v59 = vpack.i.b16 %v1270_v58, %v1043_v46  ;;  %v1276_v61 = vshrl.u32 %v1270_v58, 16 }
 0x244   : > { %v1277_v0 = vpack.i.b16 %v1276_v61, %v1275_v60  ;;  %v1286_v1 = vrot.slane %v1273_v59, %v4385_v56  ;;  %v1279_v9 = vcombine.high %v1273_v59, %v4392_v63 }
 0x245   : > { %v1047_v2 = vpop.permute.xlu0 %1046 }
 0x246   : > { %v1294_v3 = vcombine.high %v1286_v1, %v3917_v5  ;;  %v1328_v4 = vcombine.high %v1277_v0, %v4392_v63  ;;  %v1335_v6 = vrot.slane %v1277_v0, %v4385_v56  ;;  %v1050_v7 = vpack.i.b16 %v1047_v2, %v1042_v45 }
 0x247   : > { %v1053_v8 = vshrl.u32 %v1047_v2, 16  ;;  %v1301_v10 = vrot.slane %v1286_v1, %v4388_v62  ;;  %v1293_v21 = vrot.slane %v1279_v9, %v4385_v56 }
 0x248   : > { %v1308_v11 = vrot.slane %v1294_v3, %v4388_v62  ;;  %v1342_v12 = vrot.slane %v1328_v4, %v4385_v56  ;;  %v1343_v13 = vcombine.high %v1335_v6, %v3917_v5  ;;  %v1350_v15 = vrot.slane %v1335_v6, %v4388_v62 }
 0x249   : > { %v1054_v19 = vpack.i.b16 %v1053_v8, %v1052_v14  ;;  %v1069_v20 = vrot.slane %v1050_v7, %v4385_v56  ;;  %v1309_v37 = vcombine.high %v1293_v21, %v3917_v5  ;;  %v1062_v42 = vcombine.high %v1050_v7, %v4392_v63 }
 0x24a   : > { %v1377_v16 = vcombine.low %v1301_v10, %v1308_v11  ;;  %v1357_v17 = vrot.slane %v1343_v13, %v4388_v62  ;;  %v3223_v18 = vcombine.high %v1301_v10, %v1308_v11  ;;  %v1358_v22 = vcombine.high %v1342_v12, %v3917_v5 }
 0x24b   : > { %v1077_v26 = vcombine.high %v1069_v20, %v3917_v5  ;;  %v1111_v35 = vcombine.high %v1054_v19, %v4392_v63  ;;  %v1118_v36 = vrot.slane %v1054_v19, %v4385_v56  ;;  %v1084_v38 = vrot.slane %v1069_v20, %v4388_v62 }
 0x24c   : > { %v1401_v23 = vcombine.low %v1350_v15, %v1357_v17  ;;  %v3224_v25 = vcombine.high %v1350_v15, %v1357_v17  ;;  %v1384_v27 = vrot.slane %v1377_v16, %v4385_v56  ;;  %v1392_v30 = vrot.slane %v3223_v18, %v4385_v56 }
 0x24d   : > { %v1091_v34 = vrot.slane %v1077_v26, %v4388_v62  ;;  %v1372_v41 = vrot.slane %v1358_v22, %v4388_v62  ;;  %v1126_v43 = vcombine.high %v1118_v36, %v3917_v5  ;;  %v1365_v47 = vrot.slane %v1342_v12, %v4388_v62 }
 0x24e   : > { %v1408_v39 = vrot.slane %v1401_v23, %v4385_v56  ;;  %v1416_v40 = vrot.slane %v3224_v25, %v4385_v56  ;;  %v1393_v46 = vcombine.low %v1384_v27, %v1392_v30  ;;  %v1125_v48 = vrot.slane %v1111_v35, %v4385_v56 }
 0x24f   : > { %v1160_v44 = vcombine.low %v1084_v38, %v1091_v34  ;;  %v3219_v45 = vcombine.high %v1084_v38, %v1091_v34  ;;  %v1133_v49 = vrot.slane %v1118_v36, %v4388_v62  ;;  %v1140_v50 = vrot.slane %v1126_v43, %v4388_v62 }
 0x250   : > { %v1316_v51 = vrot.slane %v1293_v21, %v4388_v62  ;;  %v1323_v52 = vrot.slane %v1309_v37, %v4388_v62  ;;  %v1417_v53 = vcombine.low %v1408_v39, %v1416_v40  ;;  %v1449_v54 = vcombine.low %v1365_v47, %v1372_v41 }
 0x251   : > { %v1076_v55 = vrot.slane %v1062_v42, %v4385_v56  ;;  %v1184_v57 = vcombine.low %v1133_v49, %v1140_v50  ;;  %v3220_v58 = vcombine.high %v1133_v49, %v1140_v50  ;;  %v1167_v59 = vrot.slane %v1160_v44, %v4385_v56 }
 0x252   : > { %v1175_v60 = vrot.slane %v3219_v45, %v4385_v56  ;;  %v1400_v61 = vrot.slane %v1393_v46, %v4388_v62  ;;  %v1424_v0 = vrot.slane %v1417_v53, %v4388_v62  ;;  %v3226_v1 = vcombine.high %v1365_v47, %v1372_v41 }
 0x253   : > { %v1141_v2 = vcombine.high %v1125_v48, %v3917_v5  ;;  %v1191_v3 = vrot.slane %v1184_v57, %v4385_v56  ;;  %v1199_v4 = vrot.slane %v3220_v58, %v4385_v56  ;;  %v1425_v6 = vcombine.low %v1316_v51, %v1323_v52 }
 0x254   : > { %v3225_v7 = vcombine.high %v1316_v51, %v1323_v52  ;;  %v1475_v8 = vpack.i.b16 %v1424_v0, %v1400_v61  ;;  %v1092_v9 = vcombine.high %v1076_v55, %v3917_v5  ;;  %v1176_v11 = vcombine.low %v1167_v59, %v1175_v60 }
 0x255   : > { %v1200_v10 = vcombine.low %v1191_v3, %v1199_v4  ;;  %v1477_v13 = vshrl.u32 %v1424_v0, 16  ;;  %v1456_v14 = vrot.slane %v1449_v54, %v4385_v56  ;;  %v1155_v15 = vrot.slane %v1141_v2, %v4388_v62  ;;  %v1035_v4 = vpop.f32.mrb[0].mxu1 }
 0x256   : > { %v1707_v12 = vsel %vm1702_vm1, %v1475_v8, 0  ;;  %v1464_v16 = vrot.slane %v3226_v1, %v4385_v56  ;;  %v1476_v18 = vshrl.u32 %v1400_v61, 16  ;;  %v1432_v19 = vrot.slane %v1425_v6, %v4385_v56 }
 0x257   : > { %3383 = vmatpush3.bf16.xpose.msra.mxu1 %v1707_v12  ;;  %v1207_v17 = vrot.slane %v1200_v10, %v4388_v62  ;;  %v1440_v20 = vrot.slane %v3225_v7, %v4385_v56  ;;  %v1106_v21 = vrot.slane %v1092_v9, %v4388_v62  ;;  %v1148_v22 = vrot.slane %v1125_v48, %v4388_v62  ;;  %v3380_v7 = vpop.f32.mrb[1].mxu1  ;;  %v1893_v12 = vpop.permute.xlu1 %1892 }
 0x258   : > { %3388 = vmatprep.subr.bf16.mxu1 %v3918_v24  ;;  %v1183_v23 = vrot.slane %v1176_v11, %v4388_v62  ;;  %v1478_v25 = vpack.i.b16 %v1477_v13, %v1476_v18  ;;  %v1465_v26 = vcombine.low %v1456_v14, %v1464_v16  ;;  %v1099_v27 = vrot.slane %v1076_v55, %v4388_v62  ;;  %v1038_v8 = vpop.f32.mrb[2].mxu1 }
 0x259   : > { %v1232_v30 = vcombine.low %v1148_v22, %v1155_v15  ;;  %v3222_v34 = vcombine.high %v1148_v22, %v1155_v15  ;;  %v1441_v36 = vcombine.low %v1432_v19, %v1440_v20  ;;  %v1260_v43 = vshrl.u32 %v1207_v17, 16  ;;  %v3381_v10 = vpop.f32.mrb[3].mxu1 }
 0x25a   : > { %v1258_v35 = vpack.i.b16 %v1207_v17, %v1183_v23  ;;  %v1208_v37 = vcombine.low %v1099_v27, %v1106_v21  ;;  %v3221_v38 = vcombine.high %v1099_v27, %v1106_v21  ;;  %v1753_v39 = vsel %vm1702_vm1, %v1478_v25, 0 }
 0x25b   : > { %v1472_v40 = vrot.slane %v1465_v26, %v4388_v62  ;;  %v1239_v41 = vrot.slane %v1232_v30, %v4385_v56  ;;  %v1247_v42 = vrot.slane %v3222_v34, %v4385_v56  ;;  %v1448_v44 = vrot.slane %v1441_v36, %v4388_v62  ;;  %v1900_v21 = vpop.permute.xlu1 %1899 }
 0x25c   : > { %v1215_v45 = vrot.slane %v1208_v37, %v4385_v56  ;;  %v1223_v46 = vrot.slane %v3221_v38, %v4385_v56  ;;  %v1259_v47 = vshrl.u32 %v1183_v23, 16  ;;  %v825_v2 = vsub.s32 2, %v4348_v29  ;;  %v3270_v29 = vld [vmem:[%s759_s13] ss:$0 sm:$0xff] }
 0x25d   : > { %v1481_v48 = vpack.i.b16 %v1472_v40, %v1448_v44  ;;  %v1248_v49 = vcombine.low %v1239_v41, %v1247_v42  ;;  %v1483_v53 = vshrl.u32 %v1472_v40, 16  ;;  %v1482_v55 = vshrl.u32 %v1448_v44, 16 }
 0x25e   : > { %3385 = vmatmul.mubr.msk.bf16.vlgmr.msra.gmra.mrb[4].mxu1 %vm1702_vm1, %v1258_v35  ;;  %v1261_v50 = vpack.i.b16 %v1260_v43, %v1259_v47  ;;  %v1224_v51 = vcombine.low %v1215_v45, %v1223_v46  ;;  %v826_v3 = vrot.slane %v4355_v32, %v825_v2  ;;  %v1897_v13 = vrot.slane %v1893_v12, %v4352_v31 }
 0x25f   : > { %3389 = vmatpush3.bf16.xpose.msra.mxu1 %v1753_v39  ;;  %3390 = vmatprep.mubr.msk.bf16.mxu1 %vm3920_vm0, %v3918_v24  ;;  %v1799_v52 = vsel %vm1702_vm1, %v1481_v48, 0  ;;  %v1255_v54 = vrot.slane %v1248_v49, %v4388_v62  ;;  %v1484_v58 = vpack.i.b16 %v1483_v53, %v1482_v55  ;;  %v1888_v14 = vand.u32 127, %v815_v28 }
 0x260   : > { %3394 = vmatprep.subr.bf16.mxu1 %v3918_v24  ;;  %v1231_v57 = vrot.slane %v1224_v51, %v4388_v62  ;;  %v1036_v6 = vadd.f32 %v1035_v4, %v826_v3  ;;  %v1039_v9 = vadd.f32 %v1038_v8, %v826_v3  ;;  %v1904_v28 = vrot.slane %v1900_v21, %v4352_v31 }
 0x261   : > { %v1845_v60 = vsel %vm1702_vm1, %v1484_v58, 0  ;;  %v1266_v61 = vshrl.u32 %v1255_v54, 16  ;;  %vm1905_vm2 = vcmp.lt.s32.totalorder %v1888_v14, %v1897_v13 }
 0x262   : > { %v1264_v59 = vpack.i.b16 %v1255_v54, %v1231_v57  ;;  %v1265_v0 = vshrl.u32 %v1231_v57, 16  ;;  %v4476_v11 = vpack.c.bf16 %v1039_v9, %v1036_v6  ;;  %vm1906_vm4 = vcmp.lt.s32.totalorder %v1888_v14, %v1904_v28 }
 0x264   : > { %v1267_v1 = vpack.i.b16 %v1266_v61, %v1265_v0  ;;  %v1492_v7 = vshrl.u32 %v4476_v11, 16 }
 0x266   : > { %3391 = vmatmul.mubr.msk.bf16.vlgmr.msra.gmra.mrb[8].mxu1 %vm1702_vm1, %v1261_v50 }
 0x267   : > { %3395 = vmatpush3.bf16.xpose.msra.mxu1 %v1799_v52  ;;  %3396 = vmatprep.mubr.msk.bf16.mxu1 %vm3920_vm0, %v3918_v24 }
 0x268   : > { %3400 = vmatprep.subr.bf16.mxu1 %v3918_v24 }
 0x26e   : > { %3397 = vmatmul.mubr.msk.bf16.vlgmr.msra.gmra.mrb[12].mxu1 %vm1702_vm1, %v1264_v59 }
 0x26f   : > { %3401 = vmatpush3.bf16.xpose.msra.mxu1 %v1845_v60  ;;  %3402 = vmatprep.mubr.msk.bf16.mxu1 %vm3920_vm0, %v3918_v24 }
 0x270   : > { %3412 = vmatprep.subr.bf16.mxu1 %v3918_v24 }
 0x276   : > { %3403 = vmatmul.mubr.msk.bf16.vlgmr.msra.gmra.mrb[16].mxu1 %vm1702_vm1, %v1267_v1 }
 0x277   : > { %3414 = vmatprep.mubr.msk.bf16.mxu1 %vm3920_vm0, %v3918_v24 }
 0x331   : > { %v1743_v15 = vpop.f32.mrb[4].mxu1 }
 0x332   : > { %v1911_v16 = vsel %vm1905_vm2, %v1743_v15, -1000000.0  ;;  %v3386_v17 = vpop.f32.mrb[5].mxu1 }
 0x333   : > { %v1746_v18 = vpop.f32.mrb[6].mxu1  ;;  %v1916_v32 = vsel %vm1915_vm3, %v1911_v16, -inf }
 0x334   : > { %1917 = vmax.xlane.f32.xlu0 %v1916_v32  ;;  %v3387_v19 = vpop.f32.mrb[7].mxu1 }
 0x339   : > { %v1789_v20 = vpop.f32.mrb[8].mxu1 }
 0x33a   : > { %v1912_v22 = vsel %vm1905_vm2, %v1789_v20, -1000000.0  ;;  %v3392_v23 = vpop.f32.mrb[9].mxu1 }
 0x33b   : > { %v1792_v25 = vpop.f32.mrb[10].mxu1  ;;  %v1919_v26 = vsel %vm1915_vm3, %v1912_v22, -inf }
 0x33c   : > { %1920 = vmax.xlane.f32.xlu1 %v1919_v26  ;;  %v3393_v27 = vpop.f32.mrb[11].mxu1 }
 0x341   : > { %v1835_v30 = vpop.f32.mrb[12].mxu1 }
 0x342   : > { %v1913_v34 = vsel %vm1906_vm4, %v1835_v30, -1000000.0  ;;  %v3398_v35 = vpop.f32.mrb[13].mxu1 }
 0x343   : > { %v1838_v36 = vpop.f32.mrb[14].mxu1  ;;  %v1922_v37 = vsel %vm1915_vm3, %v1913_v34, -inf }
 0x344   : > { %1923 = vmax.xlane.f32.xlu0 %v1922_v37  ;;  %v3399_v38 = vpop.f32.mrb[15].mxu1 }
 0x349   : > { %v1881_v39 = vpop.f32.mrb[16].mxu1 }
 0x34a   : > { %v1914_v40 = vsel %vm1906_vm4, %v1881_v39, -1000000.0  ;;  %v3404_v41 = vpop.f32.mrb[17].mxu1 }
 0x34b   : > { %v1884_v42 = vpop.f32.mrb[18].mxu1  ;;  %v1925_v43 = vsel %vm1915_vm3, %v1914_v40, -inf }
 0x34c   : > { %1926 = vmax.xlane.f32.xlu0 %v1925_v43  ;;  %v3405_v44 = vpop.f32.mrb[19].mxu1 }
 0x3c1   : > { %v1918_v45 = vpop.xlane.xlu0 %1917 }
 0x3c2   : > { %v1928_v46 = vsub.f32 %v1911_v16, %v1918_v45 }
 0x3c4   : > { %v1932_v47 = vmul.f32 1.442695, %v1928_v46 }
 0x3c6   : > { %3642 = vpow2.f32 %v1932_v47 }
 0x3c9   : > { %v1921_v48 = vpop.xlane.xlu1 %1920 }
 0x3ca   : > { %v1929_v49 = vsub.f32 %v1912_v22, %v1921_v48 }
 0x3cc   : > { %v1934_v50 = vmul.f32 1.442695, %v1929_v49 }
 0x3ce   : > { %3644 = vpow2.f32 %v1934_v50 }
 0x3d0   : > { %v4485_v51 = vpop.eup %3642 }
 0x3d1   : > { %v1924_v52 = vpop.xlane.xlu0 %1923  ;;  %v1940_v53 = vsel %vm1915_vm3, %v4485_v51, 0.0 }
 0x3d2   : > { %v1930_v54 = vsub.f32 %v1913_v34, %v1924_v52  ;;  %1941 = vadd.xlane.f32.xlu1 %v1940_v53 }
 0x3d4   : > { %v1936_v55 = vmul.f32 1.442695, %v1930_v54 }
 0x3d6   : > { %3646 = vpow2.f32 %v1936_v55 }
 0x3d8   : > { %v4489_v57 = vpop.eup %3644 }
 0x3d9   : > { %v1927_v58 = vpop.xlane.xlu0 %1926  ;;  %v1943_v59 = vsel %vm1915_vm3, %v4489_v57, 0.0 }
 0x3da   : > { %v1931_v60 = vsub.f32 %v1914_v40, %v1927_v58  ;;  %1944 = vadd.xlane.f32.xlu0 %v1943_v59 }
 0x3dc   : > { %v1938_v61 = vmul.f32 1.442695, %v1931_v60 }
 0x3de   : > { %3648 = vpow2.f32 %v1938_v61 }
 0x3e0   : > { %v4493_v0 = vpop.eup %3646 }
 0x3e1   : > { %v1946_v1 = vsel %vm1915_vm3, %v4493_v0, 0.0 }
 0x3e2   : > { %1947 = vadd.xlane.f32.xlu0 %v1946_v1 }
 0x3e3   : > { %1486 = vrot.lane.b32.xlu1 %v4476_v11, %s3919_s0 }
 0x3e8   : > { %v4499_v2 = vpop.eup %3648 }
 0x3e9   : > { %v1949_v3 = vsel %vm1915_vm3, %v4499_v2, 0.0 }
 0x3ea   : > { %1950 = vadd.xlane.f32.xlu0 %v1949_v3 }
 0x45f   : > { %v1942_v4 = vpop.xlane.xlu1 %1941 }
 0x460   : > { %3650 = vrcp.f32 %v1942_v4 }
 0x463   : > { %v1487_v6 = vpop.permute.xlu1 %1486 }
 0x464   : > { %v1490_v8 = vpack.i.b16 %v1487_v6, %v4476_v11  ;;  %v1493_v9 = vshrl.u32 %v1487_v6, 16 }
 0x466   : > { %v1494_v10 = vpack.i.b16 %v1493_v9, %v1492_v7  ;;  %v1496_v12 = vcombine.high %v1490_v8, %v4392_v63  ;;  %v1503_v13 = vrot.slane %v1490_v8, %v4385_v56 }
 0x467   : > { %v1945_v17 = vpop.xlane.xlu0 %1944 }
 0x468   : > { %v1510_v14 = vrot.slane %v1496_v12, %v4385_v56  ;;  %v1511_v15 = vcombine.high %v1503_v13, %v3917_v5  ;;  %v1545_v16 = vcombine.high %v1494_v10, %v4392_v63  ;;  %v1552_v18 = vrot.slane %v1494_v10, %v4385_v56 }
 0x469   : > { %v1518_v32 = vrot.slane %v1503_v13, %v4388_v62  ;;  %3652 = vrcp.f32 %v1945_v17 }
 0x46a   : > { %v1525_v11 = vrot.slane %v1511_v15, %v4388_v62  ;;  %v1526_v19 = vcombine.high %v1510_v14, %v3917_v5  ;;  %v1559_v20 = vrot.slane %v1545_v16, %v4385_v56  ;;  %v1560_v21 = vcombine.high %v1552_v18, %v3917_v5  ;;  %v3651_v52 = vpop.eup %3650 }
 0x46b   : > { %v1533_v22 = vrot.slane %v1510_v14, %v4388_v62  ;;  %v1567_v26 = vrot.slane %v1552_v18, %v4388_v62  ;;  %v1953_v3 = vmul.f32 %v3651_v52, %v4485_v51 }
 0x46c   : > { %v1540_v23 = vrot.slane %v1526_v19, %v4388_v62  ;;  %v1575_v63 = vcombine.high %v1559_v20, %v3917_v5  ;;  %v1594_v25 = vcombine.low %v1518_v32, %v1525_v11  ;;  %v1574_v27 = vrot.slane %v1560_v21, %v4388_v62 }
 0x46d   : > { %v1582_v28 = vrot.slane %v1559_v20, %v4388_v62  ;;  %v3227_v30 = vcombine.high %v1518_v32, %v1525_v11  ;;  %v1960_v17 = vpack.c.bf16 %v1953_v3, %v1953_v3 }
 0x46e   : > { %v1589_v34 = vrot.slane %v1575_v63, %v4388_v62  ;;  %v1601_v35 = vrot.slane %v1594_v25, %v4385_v56  ;;  %v1642_v36 = vcombine.low %v1533_v22, %v1540_v23  ;;  %v3229_v37 = vcombine.high %v1533_v22, %v1540_v23  ;;  %v3594_v23 = vld [vmem:[%s4267_s22] sm:$0xff]   ;;  %v3595_v63 = vld [vmem:[%s4267_s22 + $0x8] sm:$0xff]   ;;  %v3597_v25 = vld [vmem:[%s4267_s22 + $0x18] sm:$0xff]  }
 0x46f   : > { %v1609_v38 = vrot.slane %v3227_v30, %v4385_v56  ;;  %v1618_v39 = vcombine.low %v1567_v26, %v1574_v27  ;;  %v3228_v40 = vcombine.high %v1567_v26, %v1574_v27  ;;  %v1948_v41 = vpop.xlane.xlu0 %1947  ;;  %v3598_v26 = vld [vmem:[%s4267_s22 + $0x20] sm:$0xff]   ;;  %v3600_v27 = vld [vmem:[%s4267_s22 + $0x30] sm:$0xff]  }
 0x470   : > { %v1666_v42 = vcombine.low %v1582_v28, %v1589_v34  ;;  %v3230_v43 = vcombine.high %v1582_v28, %v1589_v34  ;;  %v1649_v44 = vrot.slane %v1642_v36, %v4385_v56  ;;  %v1657_v48 = vrot.slane %v3229_v37, %v4385_v56 }
 0x471   : > { %v1610_v45 = vcombine.low %v1601_v35, %v1609_v38  ;;  %v1625_v46 = vrot.slane %v1618_v39, %v4385_v56  ;;  %v1633_v47 = vrot.slane %v3228_v40, %v4385_v56  ;;  %3654 = vrcp.f32 %v1948_v41 }
 0x472   : > { %v1673_v49 = vrot.slane %v1666_v42, %v4385_v56  ;;  %v1681_v50 = vrot.slane %v3230_v43, %v4385_v56  ;;  %v1658_v55 = vcombine.low %v1649_v44, %v1657_v48 }
 0x473   : > { %v1617_v53 = vrot.slane %v1610_v45, %v4388_v62  ;;  %v1634_v54 = vcombine.low %v1625_v46, %v1633_v47  ;;  %v3653_v59 = vpop.eup %3652 }
 0x474   : > { %v1682_v58 = vcombine.low %v1673_v49, %v1681_v50  ;;  %v1665_v61 = vrot.slane %v1658_v55, %v4388_v62  ;;  %v1955_v9 = vmul.f32 %v3653_v59, %v4489_v57 }
 0x475   : > { %v1641_v60 = vrot.slane %v1634_v54, %v4388_v62  ;;  %v1693_v7 = vshrl.u32 %v1617_v53, 16 }
 0x476   : > { %v1689_v1 = vrot.slane %v1682_v58, %v4388_v62  ;;  %v1699_v15 = vshrl.u32 %v1665_v61, 16  ;;  %v1961_v32 = vpack.c.bf16 %v1955_v9, %v1955_v9 }
 0x477   : > { %v1951_v4 = vpop.xlane.xlu0 %1950  ;;  %v1692_v6 = vpack.i.b16 %v1641_v60, %v1617_v53  ;;  %v1694_v8 = vshrl.u32 %v1641_v60, 16 }
 0x478   : > { %3656 = vrcp.f32 %v1951_v4  ;;  %v1700_v10 = vshrl.u32 %v1689_v1, 16  ;;  %v1698_v14 = vpack.i.b16 %v1689_v1, %v1665_v61 }
 0x479   : > { %v1969_v12 = vsel %vm1967_vm5, %v1692_v6, 0  ;;  %v1695_v13 = vpack.i.b16 %v1694_v8, %v1693_v7 }
 0x47a   : > { %3407 = vmatpush3.bf16.msra.mxu0 %v1969_v12  ;;  %v1701_v51 = vpack.i.b16 %v1700_v10, %v1699_v15  ;;  %v2061_v57 = vsel %vm1967_vm5, %v1698_v14, 0 }
 0x47b   : > { %v2015_v16 = vsel %vm1967_vm5, %v1695_v13, 0  ;;  %3418 = vmatprep.subr.bf16.mxu0 %v3918_v24  ;;  %v3655_v18 = vpop.eup %3654 }
 0x47c   : > { %3413 = vmatpush3.bf16.msra.mxu1 %v2015_v16  ;;  %v1957_v11 = vmul.f32 %v3655_v18, %v4493_v0  ;;  %v2107_v19 = vsel %vm1967_vm5, %v1701_v51, 0 }
 0x47d   : > { %3409 = vmatmul.mubr.msk.bf16.vlgmr.msra.gmra.mrb[4].mxu0 %vm1915_vm3, %v1960_v17  ;;  %3424 = vmatprep.subr.bf16.mxu1 %v3918_v24 }
 0x47e   : > { %3419 = vmatpush3.bf16.msra.mxu0 %v2061_v57  ;;  %3420 = vmatprep.mubr.msk.bf16.mxu0 %vm3920_vm0, %v3918_v24  ;;  %v1962_v22 = vpack.c.bf16 %v1957_v11, %v1957_v11 }
 0x47f   : > { %3415 = vmatmul.mubr.msk.bf16.vlgmr.msra.gmra.mrb[20].mxu1 %vm1915_vm3, %v1961_v32  ;;  %3430 = vmatprep.subr.bf16.mxu0 %v3918_v24 }
 0x480   : > { %3425 = vmatpush3.bf16.msra.mxu1 %v2107_v19  ;;  %3426 = vmatprep.mubr.msk.bf16.mxu1 %vm3920_vm0, %v3918_v24 }
 0x482   : > { %v3657_v20 = vpop.eup %3656 }
 0x483   : > { %v1959_v21 = vmul.f32 %v3657_v20, %v4499_v2  ;;  %v3596_v2 = vld [vmem:[%s4267_s22 + $0x10] sm:$0xff]  }
 0x485   : > { %3421 = vmatmul.mubr.msk.bf16.vlgmr.msra.gmra.mrb[8].mxu0 %vm1915_vm3, %v1962_v22  ;;  %v1963_v0 = vpack.c.bf16 %v1959_v21, %v1959_v21 }
 0x486   : > { %3446 = vmatprep.mubr.msk.bf16.mxu0 %vm3920_vm0, %v3918_v24  ;;  %3431 = vmatpush3.bf16.msra.mxu0 %v3594_v23 }
 0x487   : > { %3427 = vmatmul.mubr.msk.bf16.vlgmr.msra.gmra.mrb[24].mxu1 %vm1915_vm3, %v1963_v0  ;;  %3432 = vmatprep.subr.bf16.mxu0 %v3918_v24 }
 0x488   : > { %2688 = vmatprep.mubr.bf16.mxu1 %v3917_v5  ;;  %v3599_v5 = vld [vmem:[%s4267_s22 + $0x28] sm:$0xff]  }
 0x48a   : > { %3433 = vmatpush3.bf16.msra.mxu0 %v3595_v63 }
 0x48b   : > { %3434 = vmatprep.subr.bf16.mxu0 %v3918_v24 }
 0x48e   : > { %3435 = vmatpush3.bf16.msra.mxu0 %v3596_v2 }
 0x48f   : > { %3436 = vmatprep.subr.bf16.mxu0 %v3918_v24 }
 0x492   : > { %3437 = vmatpush3.bf16.msra.mxu0 %v3597_v25 }
 0x493   : > { %3438 = vmatprep.subr.bf16.mxu0 %v3918_v24 }
 0x496   : > { %3439 = vmatpush3.bf16.msra.mxu0 %v3598_v26 }
 0x497   : > { %3440 = vmatprep.subr.bf16.mxu0 %v3918_v24 }
 0x49a   : > { %3441 = vmatpush3.bf16.msra.mxu0 %v3599_v5 }
 0x49b   : > { %3442 = vmatprep.subr.bf16.mxu0 %v3918_v24 }
 0x49e   : > { %3443 = vmatpush3.bf16.msra.mxu0 %v3600_v27 }
 0x49f   : > { %3444 = vmatprep.subr.bf16.mxu0 %v3918_v24 }
 0x550   : > { %v2005_v28 = vpop.f32.mrb[4].mxu0 }
 0x551   : > { %v2149_v30 = vcombine.high %v2005_v28, %v3918_v24  ;;  %v3410_v34 = vpop.f32.mrb[5].mxu0  ;;  %v2156_v37 = vrot.slane %v2005_v28, %v4385_v56 }
 0x552   : > { %v2008_v35 = vpop.f32.mrb[6].mxu0  ;;  %v2051_v36 = vpop.f32.mrb[20].mxu1 }
 0x553   : > { %v2164_v38 = vcombine.high %v2051_v36, %v3918_v24  ;;  %v2171_v39 = vrot.slane %v2051_v36, %v4385_v56  ;;  %v3411_v40 = vpop.f32.mrb[7].mxu0  ;;  %v3416_v41 = vpop.f32.mrb[21].mxu1  ;;  %v2163_v43 = vrot.slane %v2149_v30, %v4385_v56 }
 0x554   : > { %v2054_v42 = vpop.f32.mrb[22].mxu1  ;;  %v3601_v40 = vld [vmem:[%s4267_s22 + $0x38] sm:$0xff]  }
 0x555   : > { %v2178_v44 = vrot.slane %v2164_v38, %v4385_v56  ;;  %v2179_v45 = vcombine.low %v2156_v37, %v2171_v39  ;;  %v2180_v46 = vcombine.high %v2156_v37, %v2171_v39  ;;  %v3417_v47 = vpop.f32.mrb[23].mxu1  ;;  %3445 = vmatpush3.bf16.msra.mxu0 %v3601_v40 }
 0x557   : > { %v2187_v48 = vrot.slane %v2179_v45, %v4388_v62  ;;  %v2194_v49 = vrot.slane %v2180_v46, %v4388_v62  ;;  %v2195_v50 = vcombine.low %v2163_v43, %v2178_v44  ;;  %v2196_v52 = vcombine.high %v2163_v43, %v2178_v44 }
 0x558   : > { %v2097_v53 = vpop.f32.mrb[8].mxu0 }
 0x559   : > { %v2203_v54 = vrot.slane %v2195_v50, %v4388_v62  ;;  %v2210_v55 = vrot.slane %v2196_v52, %v4388_v62  ;;  %v2281_v58 = vcombine.low %v2187_v48, %v2194_v49  ;;  %v3239_v59 = vcombine.high %v2187_v48, %v2194_v49  ;;  %v3422_v60 = vpop.f32.mrb[9].mxu0 }
 0x55a   : > { %v2215_v61 = vcombine.high %v2097_v53, %v3918_v24  ;;  %v2100_v1 = vpop.f32.mrb[10].mxu0  ;;  %v2143_v3 = vpop.f32.mrb[24].mxu1  ;;  %v2222_v12 = vrot.slane %v2097_v53, %v4385_v56 }
 0x55b   : > { %v2288_v4 = vrot.slane %v2281_v58, %v4385_v56  ;;  %v2296_v6 = vrot.slane %v3239_v59, %v4385_v56  ;;  %v2297_v7 = vcombine.low %v2203_v54, %v2210_v55  ;;  %v3240_v8 = vcombine.high %v2203_v54, %v2210_v55  ;;  %v3423_v9 = vpop.f32.mrb[11].mxu0  ;;  %v3428_v10 = vpop.f32.mrb[25].mxu1 }
 0x55c   : > { %v2230_v13 = vcombine.high %v2143_v3, %v3918_v24  ;;  %v2237_v14 = vrot.slane %v2143_v3, %v4385_v56  ;;  %v2146_v15 = vpop.f32.mrb[26].mxu1  ;;  %v2229_v57 = vrot.slane %v2215_v61, %v4385_v56  ;;  %v3666_v61 = vld [vmem:[#allocation2] sm:$0xff]  ;;  %v3667_v3 = vld [vmem:[#allocation2 + $0x8] sm:$0xff] }
 0x55d   : > { %v2304_v16 = vrot.slane %v2297_v7, %v4385_v56  ;;  %v2312_v17 = vrot.slane %v3240_v8, %v4385_v56  ;;  %v3429_v51 = vpop.f32.mrb[27].mxu1  ;;  %v2313_v18 = vcombine.low %v2288_v4, %v2296_v6  ;;  %v3602_v6 = vld [vmem:[%s4269_s3] ss:$8 sps:$4 sm:$0xff]   ;;  %v3604_v7 = vld [vmem:[%s4269_s3 + $0x4] ss:$8 sps:$4 sm:$0xff]  }
 0x55e   : > { %v2244_v32 = vrot.slane %v2230_v13, %v4385_v56  ;;  %v2245_v11 = vcombine.low %v2222_v12, %v2237_v14  ;;  %v2246_v19 = vcombine.high %v2222_v12, %v2237_v14  ;;  %v3607_v8 = vld [vmem:[%s4269_s3 + $0x14] ss:$8 sps:$4 sm:$0xff]   ;;  %2656 = vmatprep.subr.bf16.mxu1 %v3604_v7  ;;  %v3605_v9 = vld [vmem:[%s4269_s3 + $0x10] ss:$8 sps:$4 sm:$0xff]  }
 0x55f   : > { %v2321_v20 = vcombine.low %v2304_v16, %v2312_v17  ;;  %v2320_v23 = vrot.slane %v2313_v18, %v4388_v62  ;;  %2657 = vmatpush1.bf16.msra.mxu1 %v3602_v6  ;;  %v3610_v18 = vld [vmem:[%s4269_s3 + $0x24] ss:$8 sps:$4 sm:$0xff]  }
 0x560   : > { %v2253_v21 = vrot.slane %v2245_v11, %v4388_v62  ;;  %v2260_v24 = vrot.slane %v2246_v19, %v4388_v62  ;;  %v2261_v22 = vcombine.low %v2229_v57, %v2244_v32  ;;  %v2262_v0 = vcombine.high %v2229_v57, %v2244_v32  ;;  %2658 = vmatprep.subr.bf16.mxu1 %v3607_v8  ;;  %v3608_v57 = vld [vmem:[%s4269_s3 + $0x20] ss:$8 sps:$4 sm:$0xff]   ;;  %v3613_v32 = vld [vmem:[%s4269_s3 + $0x34] ss:$8 sps:$4 sm:$0xff]   ;;  %v3611_v11 = vld [vmem:[%s4269_s3 + $0x30] ss:$8 sps:$4 sm:$0xff]  }
 0x561   : > { %v2328_v63 = vrot.slane %v2321_v20, %v4388_v62  ;;  %v3616_v19 = vld [vmem:[%s4269_s3 + $0x44] ss:$8 sps:$4 sm:$0xff]   ;;  %v3614_v20 = vld [vmem:[%s4269_s3 + $0x40] ss:$8 sps:$4 sm:$0xff]  }
 0x562   : > { %v2269_v2 = vrot.slane %v2261_v22, %v4388_v62  ;;  %v2276_v25 = vrot.slane %v2262_v0, %v4388_v62  ;;  %v2331_v26 = vcombine.low %v2253_v21, %v2260_v24  ;;  %v3241_v5 = vcombine.high %v2253_v21, %v2260_v24  ;;  %v3617_v21 = vld [vmem:[%s4269_s3 + $0x50] ss:$8 sps:$4 sm:$0xff]   ;;  %v3619_v24 = vld [vmem:[%s4269_s3 + $0x54] ss:$8 sps:$4 sm:$0xff]   ;;  %v3622_v22 = vld [vmem:[%s4269_s3 + $0x64] ss:$8 sps:$4 sm:$0xff]  }
 0x563   : > { %v2329_v27 = vcombine.low %v2320_v23, %v2328_v63  ;;  %v2330_v28 = vcombine.high %v2320_v23, %v2328_v63  ;;  %2659 = vmatpush1.bf16.msra.mxu1 %v3605_v9  ;;  %v3620_v0 = vld [vmem:[%s4269_s3 + $0x60] ss:$8 sps:$4 sm:$0xff]   ;;  %v3625_v23 = vld [vmem:[%s4269_s3 + $0x74] ss:$8 sps:$4 sm:$0xff]   ;;  %v3623_v63 = vld [vmem:[%s4269_s3 + $0x70] ss:$8 sps:$4 sm:$0xff]  }
 0x564   : > { %v2338_v30 = vrot.slane %v2331_v26, %v4385_v56  ;;  %v2346_v34 = vrot.slane %v3241_v5, %v4385_v56  ;;  %v2347_v35 = vcombine.low %v2269_v2, %v2276_v25  ;;  %v3242_v36 = vcombine.high %v2269_v2, %v2276_v25  ;;  %2660 = vmatprep.subr.bf16.mxu1 %v3610_v18  ;;  %v3626_v2 = vld [vmem:[%s4315_s14 + $0x40] sm:$0xff]   ;;  %v3628_v26 = vld [vmem:[%s4315_s14 + $0x48] sm:$0xff]  }
 0x565   : > { %v3627_v25 = vld [vmem:[%s4315_s14] sm:$0xff]   ;;  %3340 = vmatprep.subr.bf16.mxu0 %v3626_v2  ;;  %v3629_v5 = vld [vmem:[%s4315_s14 + $0x8] sm:$0xff]  }
 0x566   : > { %v2354_v37 = vrot.slane %v2347_v35, %v4385_v56  ;;  %v2362_v38 = vrot.slane %v3242_v36, %v4385_v56  ;;  %v2363_v39 = vcombine.low %v2338_v30, %v2346_v34  ;;  %v3632_v30 = vld [vmem:[%s4315_s14 + $0x58] sm:$0xff]   ;;  %v3634_v35 = vld [vmem:[%s4315_s14 + $0x60] sm:$0xff]  }
 0x567   : > { %2661 = vmatpush1.bf16.msra.mxu1 %v3608_v57  ;;  %v3633_v34 = vld [vmem:[%s4315_s14 + $0x18] sm:$0xff]   ;;  %v3635_v36 = vld [vmem:[%s4315_s14 + $0x20] sm:$0xff]  }
 0x568   : > { %v2371_v41 = vcombine.low %v2354_v37, %v2362_v38  ;;  %v2370_v42 = vrot.slane %v2363_v39, %v4388_v62  ;;  %2662 = vmatprep.subr.bf16.mxu1 %v3613_v32  ;;  %v3636_v37 = vld [vmem:[%s4315_s14 + $0x68] sm:$0xff]  }
 0x56a   : > { %v2378_v43 = vrot.slane %v2371_v41, %v4388_v62  ;;  %v3243_v62 = vld [vmem:[%s4793_s12] ss:$0 sm:$0xff] }
 0x56b   : > { %2663 = vmatpush1.bf16.msra.mxu1 %v3611_v11 }
 0x56c   : > { %v2380_v44 = vcombine.high %v2370_v42, %v2378_v43  ;;  %v2379_v45 = vcombine.low %v2370_v42, %v2378_v43  ;;  %2664 = vmatprep.subr.bf16.mxu1 %v3616_v19 }
 0x56e   : > { %v3556_v46 = vpack.i.bf16 %v2380_v44, %v2330_v28  ;;  %v3631_v28 = vld [vmem:[%s4315_s14 + $0x10] sm:$0xff]  }
 0x56f   : > { %2665 = vmatpush1.bf16.msra.mxu1 %v3614_v20 }
 0x570   : > { %3557 = vrot.lane.b32.xlu0 %v3556_v46, %s3919_s0  ;;  %2666 = vmatprep.subr.bf16.mxu1 %v3619_v24  ;;  %v3252_v46 = vld [vmem:[%s4794_s24] ss:$0 sm:$0xff] }
 0x573   : > { %2667 = vmatpush1.bf16.msra.mxu1 %v3617_v21 }
 0x574   : > { %2668 = vmatprep.subr.bf16.mxu1 %v3622_v22 }
 0x577   : > { %2669 = vmatpush1.bf16.msra.mxu1 %v3620_v0 }
 0x578   : > { %2670 = vmatprep.subr.bf16.mxu1 %v3625_v23 }
 0x57b   : > { %2671 = vmatpush1.bf16.msra.mxu1 %v3623_v63 }
 0x5e2   : > { %v3558_v47 = vpop.permute.xlu0 %3557 }
 0x5e3   : > { %v3560_v48 = vunpack.i.h.bf16 %v3558_v47  ;;  %v3559_v49 = vunpack.i.l.bf16 %v3558_v47 }
 0x5e5   : > { %v2389_v50 = vsel %vm1702_vm1, %v2329_v27, %v3559_v49  ;;  %v2390_v56 = vsel %vm1702_vm1, %v2379_v45, %v3560_v48  ;;  %v3630_v27 = vld [vmem:[%s4315_s14 + $0x50] sm:$0xff]  }
 0x5e6   : > { %v2391_v52 = vpack.c.bf16 %v2390_v56, %v2389_v50  ;;  %v3253_v50 = vld [vmem:[%s4795_s11] ss:$0 sm:$0xff] }
 0x5e8   : > { %3447 = vmatmul.mubr.bf16.vlgmr.msra.gmra.mrb[12].mxu0 %v2391_v52 }
 0x5e9   : > { %3341 = vmatpush3.bf16.msra.mxu0 %v3627_v25 }
 0x5ea   : > { %3342 = vmatprep.subr.bf16.mxu0 %v3628_v26 }
 0x5ed   : > { %3343 = vmatpush3.bf16.msra.mxu0 %v3629_v5 }
 0x5ee   : > { %3344 = vmatprep.subr.bf16.mxu0 %v3630_v27 }
 0x5f1   : > { %3345 = vmatpush3.bf16.msra.mxu0 %v3631_v28 }
 0x5f2   : > { %3346 = vmatprep.subr.bf16.mxu0 %v3632_v30 }
 0x5f5   : > { %3347 = vmatpush3.bf16.msra.mxu0 %v3633_v34 }
 0x5f6   : > { %3348 = vmatprep.subr.bf16.mxu0 %v3634_v35 }
 0x5f9   : > { %3349 = vmatpush3.bf16.msra.mxu0 %v3635_v36 }
 0x5fa   : > { %3350 = vmatprep.subr.bf16.mxu0 %v3636_v37 }
 0x6bb   : > { %v2497_v53 = vpop.f32.mrb[12].mxu0 }
 0x6bc   : > { %v2498_v54 = vadd.f32 %v3243_v62, %v2497_v53  ;;  %v3448_v55 = vpop.f32.mrb[13].mxu0 }
 0x6bd   : > { %v2500_v58 = vpop.f32.mrb[14].mxu0  ;;  %v3638_v55 = vld [vmem:[%s4315_s14 + $0x70] sm:$0xff]  }
 0x6be   : > { %v2501_v59 = vadd.f32 %v3243_v62, %v2500_v58  ;;  %v3449_v60 = vpop.f32.mrb[15].mxu0  ;;  %v2504_v1 = vadd.f32 %v3666_v61, %v2498_v54  ;;  %v3637_v54 = vld [vmem:[%s4315_s14 + $0x28] sm:$0xff]   ;;  %v3639_v58 = vld [vmem:[%s4315_s14 + $0x30] sm:$0xff]  }
 0x6bf   : > { %3351 = vmatpush3.bf16.msra.mxu0 %v3637_v54  ;;  %v3641_v60 = vld [vmem:[%s4315_s14 + $0x38] sm:$0xff]   ;;  %v2564_v61 = vld [vmem:[%s4301_s4] sm:$0x3] }
 0x6c0   : > { %2508 = vadd.xlane.f32.xlu1 %v2504_v1  ;;  %v2505_v4 = vadd.f32 %v3667_v3, %v2501_v59  ;;  %v3640_v59 = vld [vmem:[%s4315_s14 + $0x78] sm:$0xff]   ;;  %3352 = vmatprep.subr.bf16.mxu0 %v3638_v55  ;;  %v2573_v3 = vrot.slane %v2564_v61, %v821_v33 }
 0x6c2   : > { %2510 = vadd.xlane.f32.xlu0 %v2505_v4 }
 0x6c3   : > { %3353 = vmatpush3.bf16.msra.mxu0 %v3639_v58 }
 0x6c4   : > { %3354 = vmatprep.subr.bf16.mxu0 %v3640_v59 }
 0x6c7   : > { %3355 = vmatpush3.bf16.msra.mxu0 %v3641_v60 }
 0x74d   : > { %v2509_v10 = vpop.xlane.xlu1 %2508 }
 0x74e   : > { %v2513_v12 = vmul.f32 0.0078125, %v2509_v10 }
 0x74f   : > { %v2511_v13 = vpop.xlane.xlu0 %2510 }
 0x750   : > { %v2515_v14 = vsub.f32 %v2504_v1, %v2513_v12  ;;  %v2514_v15 = vmul.f32 0.0078125, %v2511_v13  ;;  %v2569_v1 = vrot.slane %v2564_v61, %v4352_v31 }
 0x752   : > { %v4616_v16 = vsub.f32 %v2505_v4, %v2514_v15  ;;  %v2517_v17 = vmul.f32 %v2515_v14, %v2515_v14 }
 0x754   : > { %2519 = vadd.xlane.f32.xlu1 %v2517_v17  ;;  %v2518_v51 = vmul.f32 %v4616_v16, %v4616_v16 }
 0x758   : > { %2521 = vadd.xlane.f32.xlu1 %v2518_v51 }
 0x7e1   : > { %v2520_v38 = vpop.xlane.xlu1 %2519 }
 0x7e2   : > { %v2523_v39 = vmul.f32 0.0078125, %v2520_v38 }
 0x7e4   : > { %v2525_v40 = vadd.f32 1e-05, %v2523_v39  ;;  %v3287_v39 = vld [vmem:[%s762_s18] ss:$0 sm:$0xff] }
 0x7e5   : > { %v2522_v41 = vpop.xlane.xlu1 %2521 }
 0x7e6   : > { %3658 = vrsqrt.f32 %v2525_v40  ;;  %v2524_v42 = vmul.f32 0.0078125, %v2522_v41 }
 0x7e8   : > { %v2526_v43 = vadd.f32 1e-05, %v2524_v42  ;;  %v3288_v42 = vld [vmem:[%s765_s1] ss:$0 sm:$0xff] }
 0x7ea   : > { %3660 = vrsqrt.f32 %v2526_v43 }
 0x7f0   : > { %v3659_v44 = vpop.eup %3658 }
 0x7f1   : > { %v2529_v45 = vmul.f32 %v3659_v44, %v2515_v14 }
 0x7f3   : > { %v2537_v49 = vmul.f32 %v3252_v46, %v2529_v45 }
 0x7f4   : > { %v3661_v47 = vpop.eup %3660 }
 0x7f5   : > { %v2530_v48 = vmul.f32 %v3661_v47, %v4616_v16  ;;  %v2545_v52 = vadd.f32 %v3253_v50, %v2537_v49 }
 0x7f7   : > { %v2538_v56 = vmul.f32 %v3252_v46, %v2530_v48 }
 0x7f9   : > { %v2546_v62 = vadd.f32 %v3253_v50, %v2538_v56 }
 0x7fb   : > { %v2547_v53 = vpack.c.bf16 %v2546_v62, %v2545_v52 }
 0x7fd   : > { %2689 = vmatmul.mubr.bf16.vlgmr.msra.gmra.mrb[28].mxu1 %v2547_v53 }
 0x8d0   : > { %v2690_v4 = vpop.f32.mrb[28].mxu1 }
 0x8d1   : > { %v2691_v6 = vadd.f32 %v2690_v4, %v2569_v1  ;;  %v2692_v7 = vpop.f32.mrb[29].mxu1 }
 0x8d2   : > { %v2693_v8 = vadd.f32 %v2692_v7, %v2573_v3  ;;  %v2694_v9 = vpop.f32.mrb[30].mxu1 }
 0x8d3   : > { %v2695_v10 = vadd.f32 %v2694_v9, %v2569_v1  ;;  %v2696_v12 = vpop.f32.mrb[31].mxu1  ;;  %v2699_v14 = vmax.f32 %v2691_v6, 0.0 }
 0x8d4   : > { %v2697_v13 = vadd.f32 %v2696_v12, %v2573_v3  ;;  %v2700_v16 = vmax.f32 %v2693_v8, 0.0 }
 0x8d5   : > { %v2701_v15 = vmax.f32 %v2695_v10, 0.0 }
 0x8d6   : > { %v2702_v17 = vmax.f32 %v2697_v13, 0.0 }
 0x8d7   : > { %v2703_v51 = vpack.c.bf16 %v2701_v15, %v2699_v14 }
 0x8d8   : > { %v2704_v18 = vpack.c.bf16 %v2702_v17, %v2700_v16 }
 0x8da   : > { %2872 = vmatprep.mubr.bf16.mxu0 %v2704_v18 }
 0x8db   : > { %2873 = vmatmul.mubr.bf16.vlgmr.msra.gmra.mrb[16].mxu0 %v2703_v51 }
 0x9ae   : > { %v3356_v31 = vpop.f32.mrb[16].mxu0 }
 0x9af   : > { %v3357_v33 = vpop.f32.mrb[17].mxu0 }
 0x9b0   : > { %v3358_v57 = vadd.f32 %v3357_v33, %v3356_v31  ;;  %v3359_v32 = vpop.f32.mrb[18].mxu0 }
 0x9b1   : > { %v3360_v11 = vpop.f32.mrb[19].mxu0 }
 0x9b2   : > { %v2875_v19 = vadd.f32 %v3358_v57, %v3270_v29  ;;  %v3361_v20 = vadd.f32 %v3360_v11, %v3359_v32 }
 0x9b4   : > { %v2878_v21 = vadd.f32 %v3361_v20, %v3270_v29  ;;  %v2881_v24 = vadd.f32 %v2875_v19, %v2545_v52 }
 0x9b6   : > { %2885 = vadd.xlane.f32.xlu1 %v2881_v24  ;;  %v2882_v22 = vadd.f32 %v2878_v21, %v2546_v62 }
 0x9b8   : > { %2887 = vadd.xlane.f32.xlu0 %v2882_v22 }
 0xa43   : > { %v2886_v0 = vpop.xlane.xlu1 %2885 }
 0xa44   : > { %v2889_v23 = vmul.f32 0.0078125, %v2886_v0 }
 0xa45   : > { %v2888_v63 = vpop.xlane.xlu0 %2887 }
 0xa46   : > { %v2891_v2 = vsub.f32 %v2881_v24, %v2889_v23  ;;  %v2890_v25 = vmul.f32 0.0078125, %v2888_v63 }
 0xa48   : > { %v2892_v26 = vsub.f32 %v2882_v22, %v2890_v25  ;;  %v2893_v5 = vmul.f32 %v2891_v2, %v2891_v2 }
 0xa4a   : > { %2895 = vadd.xlane.f32.xlu1 %v2893_v5  ;;  %v2894_v27 = vmul.f32 %v2892_v26, %v2892_v26 }
 0xa4c   : > { %2897 = vadd.xlane.f32.xlu0 %v2894_v27 }
 0xad7   : > { %v2896_v28 = vpop.xlane.xlu1 %2895 }
 0xad8   : > { %v2899_v30 = vmul.f32 0.0078125, %v2896_v28 }
 0xad9   : > { %v2898_v34 = vpop.xlane.xlu0 %2897 }
 0xada   : > { %v2901_v35 = vadd.f32 1e-05, %v2899_v30  ;;  %v2900_v36 = vmul.f32 0.0078125, %v2898_v34 }
 0xadc   : > { %3662 = vrsqrt.f32 %v2901_v35  ;;  %v2902_v37 = vadd.f32 1e-05, %v2900_v36 }
 0xade   : > { %3664 = vrsqrt.f32 %v2902_v37 }
 0xae6   : > { %v3663_v38 = vpop.eup %3662 }
 0xae7   : > { %v2905_v40 = vmul.f32 %v3663_v38, %v2891_v2 }
 0xae8   : > { %v3665_v41 = vpop.eup %3664 }
 0xae9   : > { %v2913_v43 = vmul.f32 %v3287_v39, %v2905_v40  ;;  %v2906_v44 = vmul.f32 %v3665_v41, %v2892_v26  ;;  %2928 = sbr.rel (%p3289_p11) target bundleno = 2802 (0xaf2), region = 104 }
 0xaeb   : > { %v2921_v45 = vadd.f32 %v3288_v42, %v2913_v43  ;;  %v2914_v46 = vmul.f32 %v3287_v39, %v2906_v44 }
 0xaed   : > { %2923 = vst [vmem:[#allocation2] sm:$0xff] %v2921_v45  ;;  %v2922_v47 = vadd.f32 %v3288_v42, %v2914_v46 }
 0xaef   : > { %2924 = vst [vmem:[#allocation2 + $0x8] sm:$0xff] %v2922_v47  ;;  %v3304_v48 = vpack.c.bf16 (!%p3289_p11), %v2922_v47, %v2921_v45 }
 0xaf1   : > { %3305 = vst [vmem:[#allocation12] sm:$0xff] %v3304_v48  }
 0xaf2 PF: > { %p3490_p6 = scmp.eq.s32.totalorder %s4143_s15, 1  ;;  %s3923_s18 = smov [#allocation12]  }
 0xaf3   : > { %s2942_s30 = sshll.u32 %s3923_s18, 4  ;;  %s2943_s30 = int_to_ptr.vmem [resolvable:$true] %s2942_s30 }
 0xaf4   : > { %s3816_s9 = scalar_lea.vmem %s2943_s30, 128  ;;  %p3823_p13 = scmp.lt.s32.totalorder %s2943_s30, %s2943_s30 }
 0xaf5   : > { %p3817_p3 = scmp.ne.s32.totalorder %s2943_s30, %s3816_s9  ;;  %p3824_p2 = scmp.lt.s32.totalorder %s3816_s9, %s3816_s9 }
 0xaf7   : > { %p3818_p9 = pnand %p3817_p3, %p3490_p6  ;;  %p3825_p0 = por %p3824_p2, %p3823_p13 }
 0xaf9   : > { %p3819_p10 = pneg %p3818_p9 }
 0xafb   : > { %p3826_p8 = pnand %p3825_p0, %p3819_p10 }
 0xafd   : > { %3829 = shalt.err (!%p3826_p8)
}
 0xafe   : > { %s4799_s29 = sld [smem:[#allocation34_spill]] }
 0xb04   : > { %s4800_s20 = smov %s4799_s29  ;;  %s3830_s22 = scalar_lea.hbm %s4799_s29, 128 }
 0xb05   : > { %p3831_p1 = scmp.ne.s32.totalorder %s4800_s20, %s3830_s22  ;;  %p3836_p7 = scmp.lt.u32.totalorder %s3830_s22, %s4800_s20 }
 0xb07   : > { %p3832_p12 = pnand %p3831_p1, %p3490_p6 }
 0xb09   : > { %p3833_p4 = pneg %p3832_p12 }
 0xb0b   : > { %p3838_p5 = pnand %p3836_p7, %p3833_p4 }
 0xb0d   : > { %3841 = shalt.err (!%p3838_p5)
}
 0xb0e   : > { %s3924_s24 = smov 4  }
 0xb0f   : > { %3467 = dma.vmem_to_hbm [thread:$0]  (%p3490_p6), %s2943_s30, 128, %s4800_s20, [#allocation5], %s3919_s0, %s3919_s0, %s3924_s24  }
 0xb10   : > { %3879 = dma.done.wait (%p3490_p6), [#allocation5], 128  }
 0xb11   : > { %3881 = vsyncadd (%p3490_p6), [#allocation5], 4294967168 }
 0xb12 PF: > { %s4801_s11 = sld [smem:[#allocation20_spill]]  ;;  %s4802_s29 = sld [smem:[#allocation17_spill]] }
 0xb13   : > { %s4803_s30 = sld [smem:[#allocation18_spill]]  ;;  %s4804_s15 = sld [smem:[#allocation22_spill]] }
 0xb14   : > { %s4805_s16 = sld [smem:[#allocation19_spill]]  ;;  %s4806_s17 = sld [smem:[#allocation21_spill]] }
 0xb18   : > { %s32_s18 = sadd.s32 1, %s4801_s11  }
 0xb19   : > { %p29_p11 = scmp.ge.s32.totalorder %s32_s18, 4  }
 0xb1b   :  { %31 = sbr.rel (!%p29_p11) target bundleno = 21 (0x15), region = 190 }
 0xb22   :  { %2958 = vsyncpa [#allocation4], 1 }
 0xb23   :  { %2960 = vsyncpa [#allocation4 + $0x1], 1 }
 0xb24   :  { %2961 = vsyncpa [#allocation7], 1 }
 0xb25   :  { %2963 = vsyncpa [#allocation7 + $0x1], 1 }
 0xb26   :  { %2964 = vsyncpa [#allocation10], 1 }
 0xb27   :  { %2966 = vsyncpa [#allocation10 + $0x1], 1 }
 0xb28   :  { %2967 = vsyncpa [#allocation5], 1 }
 0xb29   :  { %2969 = vsyncpa [#allocation5 + $0x1], 1 }

</bundles_post_ra>
